<compile_context>
chip_gen: v6e
topology: v6e:2x2x1
jax: 0.10.0
libtpu: 0.0.40
codegen_flags: <defaults>
</compile_context>

<pallas_src>
import jax
import jax.numpy as jnp
import numpy as np
from jax.experimental import pallas as pl
from jax.experimental.pallas import tpu as pltpu


# ------------------------------- fused LSTM + FC kernel ------------------------------ #
def fused_lstm_kernel(x_ref, wih0_ref, whh0_ref, b0_ref,
                      wih1_ref, whh1_ref, b1_ref,
                      fcw_ref, fcb_ref, out_ref, xproj_ref, h0seq_ref):
    H = whh0_ref.shape[0]
    Bp = out_ref.shape[0]
    TB = xproj_ref.shape[0]
    T = TB // Bp

    def cell(gates, c_prev):
        # gate columns are packed [i | f | o | g]; sigmoid only over the first 3H.
        sig = jax.nn.sigmoid(gates[:, :3 * H])
        g = jnp.tanh(gates[:, 3 * H:])
        c = sig[:, H:2 * H] * c_prev + sig[:, :H] * g
        h = sig[:, 2 * H:3 * H] * jnp.tanh(c)
        return h, c

    z = jnp.zeros((Bp, H), jnp.float32)

    # ---- layer 0: hoisted input projection (one big bf16 MXU matmul, f32 acc) ----
    xproj_ref[...] = (jnp.dot(x_ref[...], wih0_ref[...],
                              preferred_element_type=jnp.float32) + b0_ref[...])

    # ---- layer-0 recurrence: 1 matmul + 1 cell per step ----
    whh0 = whh0_ref[...]                       # bf16, 8 vregs, loop-invariant

    def step0(t, carry):
        h, c = carry
        r = pl.multiple_of(t * Bp, 8)          # tile-aligned row window for time t
        gates = xproj_ref[pl.ds(r, Bp), :] + jnp.dot(
            h.astype(jnp.bfloat16), whh0, preferred_element_type=jnp.float32)
        h, c = cell(gates, c)
        h0seq_ref[pl.ds(r, Bp), :] = h         # stash hidden sequence for layer 1
        return h, c

    jax.lax.fori_loop(0, T, step0, (z, z), unroll=True)

    # ---- layer 1: hoisted input projection, overwriting the xproj scratch ----
    xproj_ref[...] = (jnp.dot(h0seq_ref[...].astype(jnp.bfloat16), wih1_ref[...],
                              preferred_element_type=jnp.float32) + b1_ref[...])

    # ---- layer-1 recurrence: 1 matmul + 1 cell per step ----
    whh1 = whh1_ref[...]

    def step1(t, carry):
        h, c = carry
        r = pl.multiple_of(t * Bp, 8)
        gates = xproj_ref[pl.ds(r, Bp), :] + jnp.dot(
            h.astype(jnp.bfloat16), whh1, preferred_element_type=jnp.float32)
        return cell(gates, c)

    h1_last, _ = jax.lax.fori_loop(0, T, step1, (z, z), unroll=True)

    # ---- FC head: lane-dense VPU multiply + lane reduce (no N=1 MXU matmul) ----
    out_ref[...] = (jnp.sum(h1_last * fcw_ref[...], axis=-1, keepdims=True)
                    + fcb_ref[...])


def lstm_forward(x, params):
    # x: (B, T, input_size) float32 (PyTorch batch_first layout)
    B, T, Cin = x.shape
    H = params["w_hh0"].shape[0]
    O = params["fc_w"].shape[1]
    G = 4 * H

    SUB = 8                                   # f32 sublane tile
    Bp = ((B + SUB - 1) // SUB) * SUB

    # permute fused gate columns [i|f|g|o] -> [i|f|o|g] (free at trace time)
    def reorder(w):
        i, f, g, o = jnp.split(w, 4, axis=-1)
        return jnp.concatenate([i, f, o, g], axis=-1)

    # pad batch to the sublane tile, flatten time-major (row index = t*Bp + b)
    x_p = jnp.pad(x, ((0, Bp - B), (0, 0), (0, 0)))
    x_tm = x_p.transpose(1, 0, 2).reshape(T * Bp, Cin).astype(jnp.bfloat16)

    wih0 = reorder(params["w_ih0"]).astype(jnp.bfloat16)
    whh0 = reorder(params["w_hh0"]).astype(jnp.bfloat16)
    wih1 = reorder(params["w_ih1"]).astype(jnp.bfloat16)
    whh1 = reorder(params["w_hh1"]).astype(jnp.bfloat16)
    b0 = reorder(params["b0"])
    b1 = reorder(params["b1"])
    fcw = params["fc_w"].T                    # (O, H) lane-dense row
    fcb = params["fc_b"].reshape(1, 1)

    def full(shape):
        return pl.BlockSpec(shape, lambda *_: (0,) * len(shape))

    out = pl.pallas_call(
        fused_lstm_kernel,
        out_shape=jax.ShapeDtypeStruct((Bp, O), jnp.float32),
        grid=(1,),
        in_specs=[
            full((T * Bp, Cin)),                           # x (time-major rows, bf16)
            full((Cin, G)), full((H, G)), full((1, G)),    # layer 0
            full((H, G)), full((H, G)), full((1, G)),      # layer 1
            full((O, H)), full((1, 1)),                    # fc (lane-dense row, scalar bias)
        ],
        out_specs=full((Bp, O)),
        scratch_shapes=[
            pltpu.VMEM((T * Bp, G), jnp.float32),   # hoisted input projections (reused by both layers)
            pltpu.VMEM((T * Bp, H), jnp.float32),   # layer-0 hidden sequence
        ],
        compiler_params=pltpu.CompilerParams(dimension_semantics=("arbitrary",)),
    )(x_tm, wih0, whh0, b0, wih1, whh1, b1, fcw, fcb)

    return out[:B]


# --------------------------------- pure-JAX reference -------------------------------- #
def reference(x, params):
    B, T, Cin = x.shape
    H = params["w_hh0"].shape[0]

    def run_layer(seq, w_ih, w_hh, b):
        h = jnp.zeros((B, H), jnp.float32)
        c = jnp.zeros((B, H), jnp.float32)
        outs = []
        for t in range(T):
            gates = seq[:, t, :] @ w_ih + h @ w_hh + b
            i = jax.nn.sigmoid(gates[:, 0:H])
            f = jax.nn.sigmoid(gates[:, H:2 * H])
            g = jnp.tanh(gates[:, 2 * H:3 * H])
            o = jax.nn.sigmoid(gates[:, 3 * H:])
            c = f * c + i * g
            h = o * jnp.tanh(c)
            outs.append(h)
        return jnp.stack(outs, axis=1)

    h1 = run_layer(x, params["w_ih0"], params["w_hh0"], params["b0"])
    h2 = run_layer(h1, params["w_ih1"], params["w_hh1"], params["b1"])
    return h2[:, -1, :] @ params["fc_w"] + params["fc_b"]


# --------------------------------------- main ---------------------------------------- #
if __name__ == "__main__":
    B, T, input_size, hidden, output_size = 2, 8, 8, 64, 1
    G = 4 * hidden

    key = jax.random.PRNGKey(0)
    ks = jax.random.split(key, 9)
    params = {
        # fused per-gate layout: columns are [i | f | g | o], each H wide (PyTorch order)
        "w_ih0": 0.1 * jax.random.normal(ks[0], (input_size, G), jnp.float32),
        "w_hh0": 0.1 * jax.random.normal(ks[1], (hidden, G), jnp.float32),
        "b0":    0.1 * jax.random.normal(ks[2], (1, G), jnp.float32),
        "w_ih1": 0.1 * jax.random.normal(ks[3], (hidden, G), jnp.float32),
        "w_hh1": 0.1 * jax.random.normal(ks[4], (hidden, G), jnp.float32),
        "b1":    0.1 * jax.random.normal(ks[5], (1, G), jnp.float32),
        "fc_w":  0.1 * jax.random.normal(ks[6], (hidden, output_size), jnp.float32),
        "fc_b":  0.1 * jax.random.normal(ks[7], (1, output_size), jnp.float32),
    }
    x = jax.random.normal(ks[8], (B, T, input_size), jnp.float32)

    out = jax.block_until_ready(lstm_forward(x, params))
    ref = jax.block_until_ready(reference(x, params))

    assert out.shape == (B, output_size)
    np.testing.assert_allclose(np.asarray(out), np.asarray(ref), rtol=1e-2, atol=1e-2)
    print("KERNEL_OK")
</pallas_src>

<mosaic_0001>
module attributes {stable_mosaic.version = 11 : i64} {
  func.func @fused_lstm_kernel(%arg0: i32, %arg1: memref<64x8xbf16, #tpu.memory_space<vmem>>, %arg2: memref<8x256xbf16, #tpu.memory_space<vmem>>, %arg3: memref<64x256xbf16, #tpu.memory_space<vmem>>, %arg4: memref<1x256xf32, #tpu.memory_space<vmem>>, %arg5: memref<64x256xbf16, #tpu.memory_space<vmem>>, %arg6: memref<64x256xbf16, #tpu.memory_space<vmem>>, %arg7: memref<1x256xf32, #tpu.memory_space<vmem>>, %arg8: memref<1x64xf32, #tpu.memory_space<vmem>>, %arg9: memref<1x1xf32, #tpu.memory_space<vmem>>, %arg10: memref<8x1xf32, #tpu.memory_space<vmem>>, %arg11: memref<64x256xf32, #tpu.memory_space<vmem>>, %arg12: memref<64x64xf32, #tpu.memory_space<vmem>>) attributes {dimension_semantics = [#tpu.dimension_semantics<arbitrary>], iteration_bounds = array<i64: 1>, scalar_prefetch = 0 : i64, scratch_operands = 2 : i64, tpu.core_type = #tpu.core_type<tc>, window_params = [{pipeline_mode = #tpu.pipeline_mode<synchronous>, transform_indices = @transform_0, window_bounds = array<i64: 64, 8>}, {pipeline_mode = #tpu.pipeline_mode<synchronous>, transform_indices = @transform_1, window_bounds = array<i64: 8, 256>}, {pipeline_mode = #tpu.pipeline_mode<synchronous>, transform_indices = @transform_2, window_bounds = array<i64: 64, 256>}, {pipeline_mode = #tpu.pipeline_mode<synchronous>, transform_indices = @transform_3, window_bounds = array<i64: 1, 256>}, {pipeline_mode = #tpu.pipeline_mode<synchronous>, transform_indices = @transform_4, window_bounds = array<i64: 64, 256>}, {pipeline_mode = #tpu.pipeline_mode<synchronous>, transform_indices = @transform_5, window_bounds = array<i64: 64, 256>}, {pipeline_mode = #tpu.pipeline_mode<synchronous>, transform_indices = @transform_6, window_bounds = array<i64: 1, 256>}, {pipeline_mode = #tpu.pipeline_mode<synchronous>, transform_indices = @transform_7, window_bounds = array<i64: 1, 64>}, {pipeline_mode = #tpu.pipeline_mode<synchronous>, transform_indices = @transform_8, window_bounds = array<i64: 1, 1>}, {pipeline_mode = #tpu.pipeline_mode<synchronous>, transform_indices = @transform_9, window_bounds = array<i64: 8, 1>}]} {
    %cst = arith.constant 0.000000e+00 : f32
    %0 = vector.broadcast %cst : f32 to vector<8x64xf32>
    %c0 = arith.constant 0 : index
    %c0_0 = arith.constant 0 : index
    %1 = vector.load %arg1[%c0, %c0_0] : memref<64x8xbf16, #tpu.memory_space<vmem>>, vector<64x8xbf16>
    %c0_1 = arith.constant 0 : index
    %c0_2 = arith.constant 0 : index
    %2 = vector.load %arg2[%c0_1, %c0_2] : memref<8x256xbf16, #tpu.memory_space<vmem>>, vector<8x256xbf16>
    %cst_3 = arith.constant dense<0.000000e+00> : vector<64x256xf32>
    %3 = tpu.matmul %1, %2, %cst_3 {dimension_numbers = #tpu.dot_dimension_numbers<[1], [0], [0], [1], [0, 0, 1, 1], [], []>} : vector<64x8xbf16>, vector<8x256xbf16>, vector<64x256xf32> -> vector<64x256xf32>
    %c0_4 = arith.constant 0 : index
    %c0_5 = arith.constant 0 : index
    %4 = vector.load %arg4[%c0_4, %c0_5] : memref<1x256xf32, #tpu.memory_space<vmem>>, vector<1x256xf32>
    %5 = vector.broadcast %4 : vector<1x256xf32> to vector<64x256xf32>
    %6 = arith.addf %3, %5 : vector<64x256xf32>
    %c0_6 = arith.constant 0 : index
    %c0_7 = arith.constant 0 : index
    %7 = vector.load %arg11[%c0_6, %c0_7] : memref<64x256xf32, #tpu.memory_space<vmem>>, vector<64x256xf32>
    tpu.vector_store %arg11[%c0_6, %c0_7], %6 {strides = array<i32>} : memref<64x256xf32, #tpu.memory_space<vmem>>, vector<64x256xf32>,
    %c0_8 = arith.constant 0 : index
    %c0_9 = arith.constant 0 : index
    %8 = vector.load %arg3[%c0_8, %c0_9] : memref<64x256xbf16, #tpu.memory_space<vmem>>, vector<64x256xbf16>
    %c0_i32 = arith.constant 0 : i32
    %c8_i32 = arith.constant 8 : i32
    %9 = arith.muli %c0_i32, %c8_i32 : i32
    %10 = tpu.assume_multiple %9, 8 : i32
    %11 = arith.index_cast %10 : i32 to index
    %c0_10 = arith.constant 0 : index
    %12 = vector.load %arg11[%11, %c0_10] : memref<64x256xf32, #tpu.memory_space<vmem>>, vector<8x256xf32>
    %13 = arith.truncf %0 : vector<8x64xf32> to vector<8x64xbf16>
    %cst_11 = arith.constant dense<0.000000e+00> : vector<8x256xf32>
    %14 = tpu.matmul %13, %8, %cst_11 {dimension_numbers = #tpu.dot_dimension_numbers<[1], [0], [0], [1], [0, 0, 1, 1], [], []>} : vector<8x64xbf16>, vector<64x256xbf16>, vector<8x256xf32> -> vector<8x256xf32>
    %15 = arith.addf %12, %14 : vector<8x256xf32>
    %16 = vector.extract_strided_slice %15 {offsets = [0, 0], sizes = [8, 192], strides = [1, 1]} : vector<8x256xf32> to vector<8x192xf32>
    %17 = arith.negf %16 : vector<8x192xf32>
    %18 = math.exp %17 : vector<8x192xf32>
    %cst_12 = arith.constant 1.000000e+00 : f32
    %19 = vector.broadcast %cst_12 : f32 to vector<8x192xf32>
    %20 = arith.addf %19, %18 : vector<8x192xf32>
    %21 = arith.divf %19, %20 : vector<8x192xf32>
    %22 = vector.extract_strided_slice %15 {offsets = [0, 192], sizes = [8, 64], strides = [1, 1]} : vector<8x256xf32> to vector<8x64xf32>
    %23 = math.tanh %22 : vector<8x64xf32>
    %24 = vector.extract_strided_slice %21 {offsets = [0, 64], sizes = [8, 64], strides = [1, 1]} : vector<8x192xf32> to vector<8x64xf32>
    %25 = arith.mulf %24, %0 : vector<8x64xf32>
    %26 = vector.extract_strided_slice %21 {offsets = [0, 0], sizes = [8, 64], strides = [1, 1]} : vector<8x192xf32> to vector<8x64xf32>
    %27 = arith.mulf %26, %23 : vector<8x64xf32>
    %28 = arith.addf %25, %27 : vector<8x64xf32>
    %29 = vector.extract_strided_slice %21 {offsets = [0, 128], sizes = [8, 64], strides = [1, 1]} : vector<8x192xf32> to vector<8x64xf32>
    %30 = math.tanh %28 : vector<8x64xf32>
    %31 = arith.mulf %29, %30 : vector<8x64xf32>
    %32 = arith.index_cast %10 : i32 to index
    %c0_13 = arith.constant 0 : index
    %33 = vector.load %arg12[%32, %c0_13] : memref<64x64xf32, #tpu.memory_space<vmem>>, vector<8x64xf32>
    tpu.vector_store %arg12[%32, %c0_13], %31 {strides = array<i32>} : memref<64x64xf32, #tpu.memory_space<vmem>>, vector<8x64xf32>,
    %c1_i32 = arith.constant 1 : i32
    %c8_i32_14 = arith.constant 8 : i32
    %34 = arith.muli %c1_i32, %c8_i32_14 : i32
    %35 = tpu.assume_multiple %34, 8 : i32
    %36 = arith.index_cast %35 : i32 to index
    %c0_15 = arith.constant 0 : index
    %37 = vector.load %arg11[%36, %c0_15] : memref<64x256xf32, #tpu.memory_space<vmem>>, vector<8x256xf32>
    %38 = arith.truncf %31 : vector<8x64xf32> to vector<8x64xbf16>
    %cst_16 = arith.constant dense<0.000000e+00> : vector<8x256xf32>
    %39 = tpu.matmul %38, %8, %cst_16 {dimension_numbers = #tpu.dot_dimension_numbers<[1], [0], [0], [1], [0, 0, 1, 1], [], []>} : vector<8x64xbf16>, vector<64x256xbf16>, vector<8x256xf32> -> vector<8x256xf32>
    %40 = arith.addf %37, %39 : vector<8x256xf32>
    %41 = vector.extract_strided_slice %40 {offsets = [0, 0], sizes = [8, 192], strides = [1, 1]} : vector<8x256xf32> to vector<8x192xf32>
    %42 = arith.negf %41 : vector<8x192xf32>
    %43 = math.exp %42 : vector<8x192xf32>
    %cst_17 = arith.constant 1.000000e+00 : f32
    %44 = vector.broadcast %cst_17 : f32 to vector<8x192xf32>
    %45 = arith.addf %44, %43 : vector<8x192xf32>
    %46 = arith.divf %44, %45 : vector<8x192xf32>
    %47 = vector.extract_strided_slice %40 {offsets = [0, 192], sizes = [8, 64], strides = [1, 1]} : vector<8x256xf32> to vector<8x64xf32>
    %48 = math.tanh %47 : vector<8x64xf32>
    %49 = vector.extract_strided_slice %46 {offsets = [0, 64], sizes = [8, 64], strides = [1, 1]} : vector<8x192xf32> to vector<8x64xf32>
    %50 = arith.mulf %49, %28 : vector<8x64xf32>
    %51 = vector.extract_strided_slice %46 {offsets = [0, 0], sizes = [8, 64], strides = [1, 1]} : vector<8x192xf32> to vector<8x64xf32>
    %52 = arith.mulf %51, %48 : vector<8x64xf32>
    %53 = arith.addf %50, %52 : vector<8x64xf32>
    %54 = vector.extract_strided_slice %46 {offsets = [0, 128], sizes = [8, 64], strides = [1, 1]} : vector<8x192xf32> to vector<8x64xf32>
    %55 = math.tanh %53 : vector<8x64xf32>
    %56 = arith.mulf %54, %55 : vector<8x64xf32>
    %57 = arith.index_cast %35 : i32 to index
    %c0_18 = arith.constant 0 : index
    %58 = vector.load %arg12[%57, %c0_18] : memref<64x64xf32, #tpu.memory_space<vmem>>, vector<8x64xf32>
    tpu.vector_store %arg12[%57, %c0_18], %56 {strides = array<i32>} : memref<64x64xf32, #tpu.memory_space<vmem>>, vector<8x64xf32>,
    %c2_i32 = arith.constant 2 : i32
    %c8_i32_19 = arith.constant 8 : i32
    %59 = arith.muli %c2_i32, %c8_i32_19 : i32
    %60 = tpu.assume_multiple %59, 8 : i32
    %61 = arith.index_cast %60 : i32 to index
    %c0_20 = arith.constant 0 : index
    %62 = vector.load %arg11[%61, %c0_20] : memref<64x256xf32, #tpu.memory_space<vmem>>, vector<8x256xf32>
    %63 = arith.truncf %56 : vector<8x64xf32> to vector<8x64xbf16>
    %cst_21 = arith.constant dense<0.000000e+00> : vector<8x256xf32>
    %64 = tpu.matmul %63, %8, %cst_21 {dimension_numbers = #tpu.dot_dimension_numbers<[1], [0], [0], [1], [0, 0, 1, 1], [], []>} : vector<8x64xbf16>, vector<64x256xbf16>, vector<8x256xf32> -> vector<8x256xf32>
    %65 = arith.addf %62, %64 : vector<8x256xf32>
    %66 = vector.extract_strided_slice %65 {offsets = [0, 0], sizes = [8, 192], strides = [1, 1]} : vector<8x256xf32> to vector<8x192xf32>
    %67 = arith.negf %66 : vector<8x192xf32>
    %68 = math.exp %67 : vector<8x192xf32>
    %cst_22 = arith.constant 1.000000e+00 : f32
    %69 = vector.broadcast %cst_22 : f32 to vector<8x192xf32>
    %70 = arith.addf %69, %68 : vector<8x192xf32>
    %71 = arith.divf %69, %70 : vector<8x192xf32>
    %72 = vector.extract_strided_slice %65 {offsets = [0, 192], sizes = [8, 64], strides = [1, 1]} : vector<8x256xf32> to vector<8x64xf32>
    %73 = math.tanh %72 : vector<8x64xf32>
    %74 = vector.extract_strided_slice %71 {offsets = [0, 64], sizes = [8, 64], strides = [1, 1]} : vector<8x192xf32> to vector<8x64xf32>
    %75 = arith.mulf %74, %53 : vector<8x64xf32>
    %76 = vector.extract_strided_slice %71 {offsets = [0, 0], sizes = [8, 64], strides = [1, 1]} : vector<8x192xf32> to vector<8x64xf32>
    %77 = arith.mulf %76, %73 : vector<8x64xf32>
    %78 = arith.addf %75, %77 : vector<8x64xf32>
    %79 = vector.extract_strided_slice %71 {offsets = [0, 128], sizes = [8, 64], strides = [1, 1]} : vector<8x192xf32> to vector<8x64xf32>
    %80 = math.tanh %78 : vector<8x64xf32>
    %81 = arith.mulf %79, %80 : vector<8x64xf32>
    %82 = arith.index_cast %60 : i32 to index
    %c0_23 = arith.constant 0 : index
    %83 = vector.load %arg12[%82, %c0_23] : memref<64x64xf32, #tpu.memory_space<vmem>>, vector<8x64xf32>
    tpu.vector_store %arg12[%82, %c0_23], %81 {strides = array<i32>} : memref<64x64xf32, #tpu.memory_space<vmem>>, vector<8x64xf32>,
    %c3_i32 = arith.constant 3 : i32
    %c8_i32_24 = arith.constant 8 : i32
    %84 = arith.muli %c3_i32, %c8_i32_24 : i32
    %85 = tpu.assume_multiple %84, 8 : i32
    %86 = arith.index_cast %85 : i32 to index
    %c0_25 = arith.constant 0 : index
    %87 = vector.load %arg11[%86, %c0_25] : memref<64x256xf32, #tpu.memory_space<vmem>>, vector<8x256xf32>
    %88 = arith.truncf %81 : vector<8x64xf32> to vector<8x64xbf16>
    %cst_26 = arith.constant dense<0.000000e+00> : vector<8x256xf32>
    %89 = tpu.matmul %88, %8, %cst_26 {dimension_numbers = #tpu.dot_dimension_numbers<[1], [0], [0], [1], [0, 0, 1, 1], [], []>} : vector<8x64xbf16>, vector<64x256xbf16>, vector<8x256xf32> -> vector<8x256xf32>
    %90 = arith.addf %87, %89 : vector<8x256xf32>
    %91 = vector.extract_strided_slice %90 {offsets = [0, 0], sizes = [8, 192], strides = [1, 1]} : vector<8x256xf32> to vector<8x192xf32>
    %92 = arith.negf %91 : vector<8x192xf32>
    %93 = math.exp %92 : vector<8x192xf32>
    %cst_27 = arith.constant 1.000000e+00 : f32
    %94 = vector.broadcast %cst_27 : f32 to vector<8x192xf32>
    %95 = arith.addf %94, %93 : vector<8x192xf32>
    %96 = arith.divf %94, %95 : vector<8x192xf32>
    %97 = vector.extract_strided_slice %90 {offsets = [0, 192], sizes = [8, 64], strides = [1, 1]} : vector<8x256xf32> to vector<8x64xf32>
    %98 = math.tanh %97 : vector<8x64xf32>
    %99 = vector.extract_strided_slice %96 {offsets = [0, 64], sizes = [8, 64], strides = [1, 1]} : vector<8x192xf32> to vector<8x64xf32>
    %100 = arith.mulf %99, %78 : vector<8x64xf32>
    %101 = vector.extract_strided_slice %96 {offsets = [0, 0], sizes = [8, 64], strides = [1, 1]} : vector<8x192xf32> to vector<8x64xf32>
    %102 = arith.mulf %101, %98 : vector<8x64xf32>
    %103 = arith.addf %100, %102 : vector<8x64xf32>
    %104 = vector.extract_strided_slice %96 {offsets = [0, 128], sizes = [8, 64], strides = [1, 1]} : vector<8x192xf32> to vector<8x64xf32>
    %105 = math.tanh %103 : vector<8x64xf32>
    %106 = arith.mulf %104, %105 : vector<8x64xf32>
    %107 = arith.index_cast %85 : i32 to index
    %c0_28 = arith.constant 0 : index
    %108 = vector.load %arg12[%107, %c0_28] : memref<64x64xf32, #tpu.memory_space<vmem>>, vector<8x64xf32>
    tpu.vector_store %arg12[%107, %c0_28], %106 {strides = array<i32>} : memref<64x64xf32, #tpu.memory_space<vmem>>, vector<8x64xf32>,
    %c4_i32 = arith.constant 4 : i32
    %c8_i32_29 = arith.constant 8 : i32
    %109 = arith.muli %c4_i32, %c8_i32_29 : i32
    %110 = tpu.assume_multiple %109, 8 : i32
    %111 = arith.index_cast %110 : i32 to index
    %c0_30 = arith.constant 0 : index
    %112 = vector.load %arg11[%111, %c0_30] : memref<64x256xf32, #tpu.memory_space<vmem>>, vector<8x256xf32>
    %113 = arith.truncf %106 : vector<8x64xf32> to vector<8x64xbf16>
    %cst_31 = arith.constant dense<0.000000e+00> : vector<8x256xf32>
    %114 = tpu.matmul %113, %8, %cst_31 {dimension_numbers = #tpu.dot_dimension_numbers<[1], [0], [0], [1], [0, 0, 1, 1], [], []>} : vector<8x64xbf16>, vector<64x256xbf16>, vector<8x256xf32> -> vector<8x256xf32>
    %115 = arith.addf %112, %114 : vector<8x256xf32>
    %116 = vector.extract_strided_slice %115 {offsets = [0, 0], sizes = [8, 192], strides = [1, 1]} : vector<8x256xf32> to vector<8x192xf32>
    %117 = arith.negf %116 : vector<8x192xf32>
    %118 = math.exp %117 : vector<8x192xf32>
    %cst_32 = arith.constant 1.000000e+00 : f32
    %119 = vector.broadcast %cst_32 : f32 to vector<8x192xf32>
    %120 = arith.addf %119, %118 : vector<8x192xf32>
    %121 = arith.divf %119, %120 : vector<8x192xf32>
    %122 = vector.extract_strided_slice %115 {offsets = [0, 192], sizes = [8, 64], strides = [1, 1]} : vector<8x256xf32> to vector<8x64xf32>
    %123 = math.tanh %122 : vector<8x64xf32>
    %124 = vector.extract_strided_slice %121 {offsets = [0, 64], sizes = [8, 64], strides = [1, 1]} : vector<8x192xf32> to vector<8x64xf32>
    %125 = arith.mulf %124, %103 : vector<8x64xf32>
    %126 = vector.extract_strided_slice %121 {offsets = [0, 0], sizes = [8, 64], strides = [1, 1]} : vector<8x192xf32> to vector<8x64xf32>
    %127 = arith.mulf %126, %123 : vector<8x64xf32>
    %128 = arith.addf %125, %127 : vector<8x64xf32>
    %129 = vector.extract_strided_slice %121 {offsets = [0, 128], sizes = [8, 64], strides = [1, 1]} : vector<8x192xf32> to vector<8x64xf32>
    %130 = math.tanh %128 : vector<8x64xf32>
    %131 = arith.mulf %129, %130 : vector<8x64xf32>
    %132 = arith.index_cast %110 : i32 to index
    %c0_33 = arith.constant 0 : index
    %133 = vector.load %arg12[%132, %c0_33] : memref<64x64xf32, #tpu.memory_space<vmem>>, vector<8x64xf32>
    tpu.vector_store %arg12[%132, %c0_33], %131 {strides = array<i32>} : memref<64x64xf32, #tpu.memory_space<vmem>>, vector<8x64xf32>,
    %c5_i32 = arith.constant 5 : i32
    %c8_i32_34 = arith.constant 8 : i32
    %134 = arith.muli %c5_i32, %c8_i32_34 : i32
    %135 = tpu.assume_multiple %134, 8 : i32
    %136 = arith.index_cast %135 : i32 to index
    %c0_35 = arith.constant 0 : index
    %137 = vector.load %arg11[%136, %c0_35] : memref<64x256xf32, #tpu.memory_space<vmem>>, vector<8x256xf32>
    %138 = arith.truncf %131 : vector<8x64xf32> to vector<8x64xbf16>
    %cst_36 = arith.constant dense<0.000000e+00> : vector<8x256xf32>
    %139 = tpu.matmul %138, %8, %cst_36 {dimension_numbers = #tpu.dot_dimension_numbers<[1], [0], [0], [1], [0, 0, 1, 1], [], []>} : vector<8x64xbf16>, vector<64x256xbf16>, vector<8x256xf32> -> vector<8x256xf32>
    %140 = arith.addf %137, %139 : vector<8x256xf32>
    %141 = vector.extract_strided_slice %140 {offsets = [0, 0], sizes = [8, 192], strides = [1, 1]} : vector<8x256xf32> to vector<8x192xf32>
    %142 = arith.negf %141 : vector<8x192xf32>
    %143 = math.exp %142 : vector<8x192xf32>
    %cst_37 = arith.constant 1.000000e+00 : f32
    %144 = vector.broadcast %cst_37 : f32 to vector<8x192xf32>
    %145 = arith.addf %144, %143 : vector<8x192xf32>
    %146 = arith.divf %144, %145 : vector<8x192xf32>
    %147 = vector.extract_strided_slice %140 {offsets = [0, 192], sizes = [8, 64], strides = [1, 1]} : vector<8x256xf32> to vector<8x64xf32>
    %148 = math.tanh %147 : vector<8x64xf32>
    %149 = vector.extract_strided_slice %146 {offsets = [0, 64], sizes = [8, 64], strides = [1, 1]} : vector<8x192xf32> to vector<8x64xf32>
    %150 = arith.mulf %149, %128 : vector<8x64xf32>
    %151 = vector.extract_strided_slice %146 {offsets = [0, 0], sizes = [8, 64], strides = [1, 1]} : vector<8x192xf32> to vector<8x64xf32>
    %152 = arith.mulf %151, %148 : vector<8x64xf32>
    %153 = arith.addf %150, %152 : vector<8x64xf32>
    %154 = vector.extract_strided_slice %146 {offsets = [0, 128], sizes = [8, 64], strides = [1, 1]} : vector<8x192xf32> to vector<8x64xf32>
    %155 = math.tanh %153 : vector<8x64xf32>
    %156 = arith.mulf %154, %155 : vector<8x64xf32>
    %157 = arith.index_cast %135 : i32 to index
    %c0_38 = arith.constant 0 : index
    %158 = vector.load %arg12[%157, %c0_38] : memref<64x64xf32, #tpu.memory_space<vmem>>, vector<8x64xf32>
    tpu.vector_store %arg12[%157, %c0_38], %156 {strides = array<i32>} : memref<64x64xf32, #tpu.memory_space<vmem>>, vector<8x64xf32>,
    %c6_i32 = arith.constant 6 : i32
    %c8_i32_39 = arith.constant 8 : i32
    %159 = arith.muli %c6_i32, %c8_i32_39 : i32
    %160 = tpu.assume_multiple %159, 8 : i32
    %161 = arith.index_cast %160 : i32 to index
    %c0_40 = arith.constant 0 : index
    %162 = vector.load %arg11[%161, %c0_40] : memref<64x256xf32, #tpu.memory_space<vmem>>, vector<8x256xf32>
    %163 = arith.truncf %156 : vector<8x64xf32> to vector<8x64xbf16>
    %cst_41 = arith.constant dense<0.000000e+00> : vector<8x256xf32>
    %164 = tpu.matmul %163, %8, %cst_41 {dimension_numbers = #tpu.dot_dimension_numbers<[1], [0], [0], [1], [0, 0, 1, 1], [], []>} : vector<8x64xbf16>, vector<64x256xbf16>, vector<8x256xf32> -> vector<8x256xf32>
    %165 = arith.addf %162, %164 : vector<8x256xf32>
    %166 = vector.extract_strided_slice %165 {offsets = [0, 0], sizes = [8, 192], strides = [1, 1]} : vector<8x256xf32> to vector<8x192xf32>
    %167 = arith.negf %166 : vector<8x192xf32>
    %168 = math.exp %167 : vector<8x192xf32>
    %cst_42 = arith.constant 1.000000e+00 : f32
    %169 = vector.broadcast %cst_42 : f32 to vector<8x192xf32>
    %170 = arith.addf %169, %168 : vector<8x192xf32>
    %171 = arith.divf %169, %170 : vector<8x192xf32>
    %172 = vector.extract_strided_slice %165 {offsets = [0, 192], sizes = [8, 64], strides = [1, 1]} : vector<8x256xf32> to vector<8x64xf32>
    %173 = math.tanh %172 : vector<8x64xf32>
    %174 = vector.extract_strided_slice %171 {offsets = [0, 64], sizes = [8, 64], strides = [1, 1]} : vector<8x192xf32> to vector<8x64xf32>
    %175 = arith.mulf %174, %153 : vector<8x64xf32>
    %176 = vector.extract_strided_slice %171 {offsets = [0, 0], sizes = [8, 64], strides = [1, 1]} : vector<8x192xf32> to vector<8x64xf32>
    %177 = arith.mulf %176, %173 : vector<8x64xf32>
    %178 = arith.addf %175, %177 : vector<8x64xf32>
    %179 = vector.extract_strided_slice %171 {offsets = [0, 128], sizes = [8, 64], strides = [1, 1]} : vector<8x192xf32> to vector<8x64xf32>
    %180 = math.tanh %178 : vector<8x64xf32>
    %181 = arith.mulf %179, %180 : vector<8x64xf32>
    %182 = arith.index_cast %160 : i32 to index
    %c0_43 = arith.constant 0 : index
    %183 = vector.load %arg12[%182, %c0_43] : memref<64x64xf32, #tpu.memory_space<vmem>>, vector<8x64xf32>
    tpu.vector_store %arg12[%182, %c0_43], %181 {strides = array<i32>} : memref<64x64xf32, #tpu.memory_space<vmem>>, vector<8x64xf32>,
    %c7_i32 = arith.constant 7 : i32
    %c8_i32_44 = arith.constant 8 : i32
    %184 = arith.muli %c7_i32, %c8_i32_44 : i32
    %185 = tpu.assume_multiple %184, 8 : i32
    %186 = arith.index_cast %185 : i32 to index
    %c0_45 = arith.constant 0 : index
    %187 = vector.load %arg11[%186, %c0_45] : memref<64x256xf32, #tpu.memory_space<vmem>>, vector<8x256xf32>
    %188 = arith.truncf %181 : vector<8x64xf32> to vector<8x64xbf16>
    %cst_46 = arith.constant dense<0.000000e+00> : vector<8x256xf32>
    %189 = tpu.matmul %188, %8, %cst_46 {dimension_numbers = #tpu.dot_dimension_numbers<[1], [0], [0], [1], [0, 0, 1, 1], [], []>} : vector<8x64xbf16>, vector<64x256xbf16>, vector<8x256xf32> -> vector<8x256xf32>
    %190 = arith.addf %187, %189 : vector<8x256xf32>
    %191 = vector.extract_strided_slice %190 {offsets = [0, 0], sizes = [8, 192], strides = [1, 1]} : vector<8x256xf32> to vector<8x192xf32>
    %192 = arith.negf %191 : vector<8x192xf32>
    %193 = math.exp %192 : vector<8x192xf32>
    %cst_47 = arith.constant 1.000000e+00 : f32
    %194 = vector.broadcast %cst_47 : f32 to vector<8x192xf32>
    %195 = arith.addf %194, %193 : vector<8x192xf32>
    %196 = arith.divf %194, %195 : vector<8x192xf32>
    %197 = vector.extract_strided_slice %190 {offsets = [0, 192], sizes = [8, 64], strides = [1, 1]} : vector<8x256xf32> to vector<8x64xf32>
    %198 = math.tanh %197 : vector<8x64xf32>
    %199 = vector.extract_strided_slice %196 {offsets = [0, 64], sizes = [8, 64], strides = [1, 1]} : vector<8x192xf32> to vector<8x64xf32>
    %200 = arith.mulf %199, %178 : vector<8x64xf32>
    %201 = vector.extract_strided_slice %196 {offsets = [0, 0], sizes = [8, 64], strides = [1, 1]} : vector<8x192xf32> to vector<8x64xf32>
    %202 = arith.mulf %201, %198 : vector<8x64xf32>
    %203 = arith.addf %200, %202 : vector<8x64xf32>
    %204 = vector.extract_strided_slice %196 {offsets = [0, 128], sizes = [8, 64], strides = [1, 1]} : vector<8x192xf32> to vector<8x64xf32>
    %205 = math.tanh %203 : vector<8x64xf32>
    %206 = arith.mulf %204, %205 : vector<8x64xf32>
    %207 = arith.index_cast %185 : i32 to index
    %c0_48 = arith.constant 0 : index
    %208 = vector.load %arg12[%207, %c0_48] : memref<64x64xf32, #tpu.memory_space<vmem>>, vector<8x64xf32>
    tpu.vector_store %arg12[%207, %c0_48], %206 {strides = array<i32>} : memref<64x64xf32, #tpu.memory_space<vmem>>, vector<8x64xf32>,
    %c8_i32_49 = arith.constant 8 : i32
    %c0_50 = arith.constant 0 : index
    %c0_51 = arith.constant 0 : index
    %209 = vector.load %arg12[%c0_50, %c0_51] : memref<64x64xf32, #tpu.memory_space<vmem>>, vector<64x64xf32>
    %210 = arith.truncf %209 : vector<64x64xf32> to vector<64x64xbf16>
    %c0_52 = arith.constant 0 : index
    %c0_53 = arith.constant 0 : index
    %211 = vector.load %arg5[%c0_52, %c0_53] : memref<64x256xbf16, #tpu.memory_space<vmem>>, vector<64x256xbf16>
    %cst_54 = arith.constant dense<0.000000e+00> : vector<64x256xf32>
    %212 = tpu.matmul %210, %211, %cst_54 {dimension_numbers = #tpu.dot_dimension_numbers<[1], [0], [0], [1], [0, 0, 1, 1], [], []>} : vector<64x64xbf16>, vector<64x256xbf16>, vector<64x256xf32> -> vector<64x256xf32>
    %c0_55 = arith.constant 0 : index
    %c0_56 = arith.constant 0 : index
    %213 = vector.load %arg7[%c0_55, %c0_56] : memref<1x256xf32, #tpu.memory_space<vmem>>, vector<1x256xf32>
    %214 = vector.broadcast %213 : vector<1x256xf32> to vector<64x256xf32>
    %215 = arith.addf %212, %214 : vector<64x256xf32>
    %c0_57 = arith.constant 0 : index
    %c0_58 = arith.constant 0 : index
    %216 = vector.load %arg11[%c0_57, %c0_58] : memref<64x256xf32, #tpu.memory_space<vmem>>, vector<64x256xf32>
    tpu.vector_store %arg11[%c0_57, %c0_58], %215 {strides = array<i32>} : memref<64x256xf32, #tpu.memory_space<vmem>>, vector<64x256xf32>,
    %c0_59 = arith.constant 0 : index
    %c0_60 = arith.constant 0 : index
    %217 = vector.load %arg6[%c0_59, %c0_60] : memref<64x256xbf16, #tpu.memory_space<vmem>>, vector<64x256xbf16>
    %c0_i32_61 = arith.constant 0 : i32
    %c8_i32_62 = arith.constant 8 : i32
    %218 = arith.muli %c0_i32_61, %c8_i32_62 : i32
    %219 = tpu.assume_multiple %218, 8 : i32
    %220 = arith.index_cast %219 : i32 to index
    %c0_63 = arith.constant 0 : index
    %221 = vector.load %arg11[%220, %c0_63] : memref<64x256xf32, #tpu.memory_space<vmem>>, vector<8x256xf32>
    %222 = arith.truncf %0 : vector<8x64xf32> to vector<8x64xbf16>
    %cst_64 = arith.constant dense<0.000000e+00> : vector<8x256xf32>
    %223 = tpu.matmul %222, %217, %cst_64 {dimension_numbers = #tpu.dot_dimension_numbers<[1], [0], [0], [1], [0, 0, 1, 1], [], []>} : vector<8x64xbf16>, vector<64x256xbf16>, vector<8x256xf32> -> vector<8x256xf32>
    %224 = arith.addf %221, %223 : vector<8x256xf32>
    %225 = vector.extract_strided_slice %224 {offsets = [0, 0], sizes = [8, 192], strides = [1, 1]} : vector<8x256xf32> to vector<8x192xf32>
    %226 = arith.negf %225 : vector<8x192xf32>
    %227 = math.exp %226 : vector<8x192xf32>
    %cst_65 = arith.constant 1.000000e+00 : f32
    %228 = vector.broadcast %cst_65 : f32 to vector<8x192xf32>
    %229 = arith.addf %228, %227 : vector<8x192xf32>
    %230 = arith.divf %228, %229 : vector<8x192xf32>
    %231 = vector.extract_strided_slice %224 {offsets = [0, 192], sizes = [8, 64], strides = [1, 1]} : vector<8x256xf32> to vector<8x64xf32>
    %232 = math.tanh %231 : vector<8x64xf32>
    %233 = vector.extract_strided_slice %230 {offsets = [0, 64], sizes = [8, 64], strides = [1, 1]} : vector<8x192xf32> to vector<8x64xf32>
    %234 = arith.mulf %233, %0 : vector<8x64xf32>
    %235 = vector.extract_strided_slice %230 {offsets = [0, 0], sizes = [8, 64], strides = [1, 1]} : vector<8x192xf32> to vector<8x64xf32>
    %236 = arith.mulf %235, %232 : vector<8x64xf32>
    %237 = arith.addf %234, %236 : vector<8x64xf32>
    %238 = vector.extract_strided_slice %230 {offsets = [0, 128], sizes = [8, 64], strides = [1, 1]} : vector<8x192xf32> to vector<8x64xf32>
    %239 = math.tanh %237 : vector<8x64xf32>
    %240 = arith.mulf %238, %239 : vector<8x64xf32>
    %c1_i32_66 = arith.constant 1 : i32
    %c8_i32_67 = arith.constant 8 : i32
    %241 = arith.muli %c1_i32_66, %c8_i32_67 : i32
    %242 = tpu.assume_multiple %241, 8 : i32
    %243 = arith.index_cast %242 : i32 to index
    %c0_68 = arith.constant 0 : index
    %244 = vector.load %arg11[%243, %c0_68] : memref<64x256xf32, #tpu.memory_space<vmem>>, vector<8x256xf32>
    %245 = arith.truncf %240 : vector<8x64xf32> to vector<8x64xbf16>
    %cst_69 = arith.constant dense<0.000000e+00> : vector<8x256xf32>
    %246 = tpu.matmul %245, %217, %cst_69 {dimension_numbers = #tpu.dot_dimension_numbers<[1], [0], [0], [1], [0, 0, 1, 1], [], []>} : vector<8x64xbf16>, vector<64x256xbf16>, vector<8x256xf32> -> vector<8x256xf32>
    %247 = arith.addf %244, %246 : vector<8x256xf32>
    %248 = vector.extract_strided_slice %247 {offsets = [0, 0], sizes = [8, 192], strides = [1, 1]} : vector<8x256xf32> to vector<8x192xf32>
    %249 = arith.negf %248 : vector<8x192xf32>
    %250 = math.exp %249 : vector<8x192xf32>
    %cst_70 = arith.constant 1.000000e+00 : f32
    %251 = vector.broadcast %cst_70 : f32 to vector<8x192xf32>
    %252 = arith.addf %251, %250 : vector<8x192xf32>
    %253 = arith.divf %251, %252 : vector<8x192xf32>
    %254 = vector.extract_strided_slice %247 {offsets = [0, 192], sizes = [8, 64], strides = [1, 1]} : vector<8x256xf32> to vector<8x64xf32>
    %255 = math.tanh %254 : vector<8x64xf32>
    %256 = vector.extract_strided_slice %253 {offsets = [0, 64], sizes = [8, 64], strides = [1, 1]} : vector<8x192xf32> to vector<8x64xf32>
    %257 = arith.mulf %256, %237 : vector<8x64xf32>
    %258 = vector.extract_strided_slice %253 {offsets = [0, 0], sizes = [8, 64], strides = [1, 1]} : vector<8x192xf32> to vector<8x64xf32>
    %259 = arith.mulf %258, %255 : vector<8x64xf32>
    %260 = arith.addf %257, %259 : vector<8x64xf32>
    %261 = vector.extract_strided_slice %253 {offsets = [0, 128], sizes = [8, 64], strides = [1, 1]} : vector<8x192xf32> to vector<8x64xf32>
    %262 = math.tanh %260 : vector<8x64xf32>
    %263 = arith.mulf %261, %262 : vector<8x64xf32>
    %c2_i32_71 = arith.constant 2 : i32
    %c8_i32_72 = arith.constant 8 : i32
    %264 = arith.muli %c2_i32_71, %c8_i32_72 : i32
    %265 = tpu.assume_multiple %264, 8 : i32
    %266 = arith.index_cast %265 : i32 to index
    %c0_73 = arith.constant 0 : index
    %267 = vector.load %arg11[%266, %c0_73] : memref<64x256xf32, #tpu.memory_space<vmem>>, vector<8x256xf32>
    %268 = arith.truncf %263 : vector<8x64xf32> to vector<8x64xbf16>
    %cst_74 = arith.constant dense<0.000000e+00> : vector<8x256xf32>
    %269 = tpu.matmul %268, %217, %cst_74 {dimension_numbers = #tpu.dot_dimension_numbers<[1], [0], [0], [1], [0, 0, 1, 1], [], []>} : vector<8x64xbf16>, vector<64x256xbf16>, vector<8x256xf32> -> vector<8x256xf32>
    %270 = arith.addf %267, %269 : vector<8x256xf32>
    %271 = vector.extract_strided_slice %270 {offsets = [0, 0], sizes = [8, 192], strides = [1, 1]} : vector<8x256xf32> to vector<8x192xf32>
    %272 = arith.negf %271 : vector<8x192xf32>
    %273 = math.exp %272 : vector<8x192xf32>
    %cst_75 = arith.constant 1.000000e+00 : f32
    %274 = vector.broadcast %cst_75 : f32 to vector<8x192xf32>
    %275 = arith.addf %274, %273 : vector<8x192xf32>
    %276 = arith.divf %274, %275 : vector<8x192xf32>
    %277 = vector.extract_strided_slice %270 {offsets = [0, 192], sizes = [8, 64], strides = [1, 1]} : vector<8x256xf32> to vector<8x64xf32>
    %278 = math.tanh %277 : vector<8x64xf32>
    %279 = vector.extract_strided_slice %276 {offsets = [0, 64], sizes = [8, 64], strides = [1, 1]} : vector<8x192xf32> to vector<8x64xf32>
    %280 = arith.mulf %279, %260 : vector<8x64xf32>
    %281 = vector.extract_strided_slice %276 {offsets = [0, 0], sizes = [8, 64], strides = [1, 1]} : vector<8x192xf32> to vector<8x64xf32>
    %282 = arith.mulf %281, %278 : vector<8x64xf32>
    %283 = arith.addf %280, %282 : vector<8x64xf32>
    %284 = vector.extract_strided_slice %276 {offsets = [0, 128], sizes = [8, 64], strides = [1, 1]} : vector<8x192xf32> to vector<8x64xf32>
    %285 = math.tanh %283 : vector<8x64xf32>
    %286 = arith.mulf %284, %285 : vector<8x64xf32>
    %c3_i32_76 = arith.constant 3 : i32
    %c8_i32_77 = arith.constant 8 : i32
    %287 = arith.muli %c3_i32_76, %c8_i32_77 : i32
    %288 = tpu.assume_multiple %287, 8 : i32
    %289 = arith.index_cast %288 : i32 to index
    %c0_78 = arith.constant 0 : index
    %290 = vector.load %arg11[%289, %c0_78] : memref<64x256xf32, #tpu.memory_space<vmem>>, vector<8x256xf32>
    %291 = arith.truncf %286 : vector<8x64xf32> to vector<8x64xbf16>
    %cst_79 = arith.constant dense<0.000000e+00> : vector<8x256xf32>
    %292 = tpu.matmul %291, %217, %cst_79 {dimension_numbers = #tpu.dot_dimension_numbers<[1], [0], [0], [1], [0, 0, 1, 1], [], []>} : vector<8x64xbf16>, vector<64x256xbf16>, vector<8x256xf32> -> vector<8x256xf32>
    %293 = arith.addf %290, %292 : vector<8x256xf32>
    %294 = vector.extract_strided_slice %293 {offsets = [0, 0], sizes = [8, 192], strides = [1, 1]} : vector<8x256xf32> to vector<8x192xf32>
    %295 = arith.negf %294 : vector<8x192xf32>
    %296 = math.exp %295 : vector<8x192xf32>
    %cst_80 = arith.constant 1.000000e+00 : f32
    %297 = vector.broadcast %cst_80 : f32 to vector<8x192xf32>
    %298 = arith.addf %297, %296 : vector<8x192xf32>
    %299 = arith.divf %297, %298 : vector<8x192xf32>
    %300 = vector.extract_strided_slice %293 {offsets = [0, 192], sizes = [8, 64], strides = [1, 1]} : vector<8x256xf32> to vector<8x64xf32>
    %301 = math.tanh %300 : vector<8x64xf32>
    %302 = vector.extract_strided_slice %299 {offsets = [0, 64], sizes = [8, 64], strides = [1, 1]} : vector<8x192xf32> to vector<8x64xf32>
    %303 = arith.mulf %302, %283 : vector<8x64xf32>
    %304 = vector.extract_strided_slice %299 {offsets = [0, 0], sizes = [8, 64], strides = [1, 1]} : vector<8x192xf32> to vector<8x64xf32>
    %305 = arith.mulf %304, %301 : vector<8x64xf32>
    %306 = arith.addf %303, %305 : vector<8x64xf32>
    %307 = vector.extract_strided_slice %299 {offsets = [0, 128], sizes = [8, 64], strides = [1, 1]} : vector<8x192xf32> to vector<8x64xf32>
    %308 = math.tanh %306 : vector<8x64xf32>
    %309 = arith.mulf %307, %308 : vector<8x64xf32>
    %c4_i32_81 = arith.constant 4 : i32
    %c8_i32_82 = arith.constant 8 : i32
    %310 = arith.muli %c4_i32_81, %c8_i32_82 : i32
    %311 = tpu.assume_multiple %310, 8 : i32
    %312 = arith.index_cast %311 : i32 to index
    %c0_83 = arith.constant 0 : index
    %313 = vector.load %arg11[%312, %c0_83] : memref<64x256xf32, #tpu.memory_space<vmem>>, vector<8x256xf32>
    %314 = arith.truncf %309 : vector<8x64xf32> to vector<8x64xbf16>
    %cst_84 = arith.constant dense<0.000000e+00> : vector<8x256xf32>
    %315 = tpu.matmul %314, %217, %cst_84 {dimension_numbers = #tpu.dot_dimension_numbers<[1], [0], [0], [1], [0, 0, 1, 1], [], []>} : vector<8x64xbf16>, vector<64x256xbf16>, vector<8x256xf32> -> vector<8x256xf32>
    %316 = arith.addf %313, %315 : vector<8x256xf32>
    %317 = vector.extract_strided_slice %316 {offsets = [0, 0], sizes = [8, 192], strides = [1, 1]} : vector<8x256xf32> to vector<8x192xf32>
    %318 = arith.negf %317 : vector<8x192xf32>
    %319 = math.exp %318 : vector<8x192xf32>
    %cst_85 = arith.constant 1.000000e+00 : f32
    %320 = vector.broadcast %cst_85 : f32 to vector<8x192xf32>
    %321 = arith.addf %320, %319 : vector<8x192xf32>
    %322 = arith.divf %320, %321 : vector<8x192xf32>
    %323 = vector.extract_strided_slice %316 {offsets = [0, 192], sizes = [8, 64], strides = [1, 1]} : vector<8x256xf32> to vector<8x64xf32>
    %324 = math.tanh %323 : vector<8x64xf32>
    %325 = vector.extract_strided_slice %322 {offsets = [0, 64], sizes = [8, 64], strides = [1, 1]} : vector<8x192xf32> to vector<8x64xf32>
    %326 = arith.mulf %325, %306 : vector<8x64xf32>
    %327 = vector.extract_strided_slice %322 {offsets = [0, 0], sizes = [8, 64], strides = [1, 1]} : vector<8x192xf32> to vector<8x64xf32>
    %328 = arith.mulf %327, %324 : vector<8x64xf32>
    %329 = arith.addf %326, %328 : vector<8x64xf32>
    %330 = vector.extract_strided_slice %322 {offsets = [0, 128], sizes = [8, 64], strides = [1, 1]} : vector<8x192xf32> to vector<8x64xf32>
    %331 = math.tanh %329 : vector<8x64xf32>
    %332 = arith.mulf %330, %331 : vector<8x64xf32>
    %c5_i32_86 = arith.constant 5 : i32
    %c8_i32_87 = arith.constant 8 : i32
    %333 = arith.muli %c5_i32_86, %c8_i32_87 : i32
    %334 = tpu.assume_multiple %333, 8 : i32
    %335 = arith.index_cast %334 : i32 to index
    %c0_88 = arith.constant 0 : index
    %336 = vector.load %arg11[%335, %c0_88] : memref<64x256xf32, #tpu.memory_space<vmem>>, vector<8x256xf32>
    %337 = arith.truncf %332 : vector<8x64xf32> to vector<8x64xbf16>
    %cst_89 = arith.constant dense<0.000000e+00> : vector<8x256xf32>
    %338 = tpu.matmul %337, %217, %cst_89 {dimension_numbers = #tpu.dot_dimension_numbers<[1], [0], [0], [1], [0, 0, 1, 1], [], []>} : vector<8x64xbf16>, vector<64x256xbf16>, vector<8x256xf32> -> vector<8x256xf32>
    %339 = arith.addf %336, %338 : vector<8x256xf32>
    %340 = vector.extract_strided_slice %339 {offsets = [0, 0], sizes = [8, 192], strides = [1, 1]} : vector<8x256xf32> to vector<8x192xf32>
    %341 = arith.negf %340 : vector<8x192xf32>
    %342 = math.exp %341 : vector<8x192xf32>
    %cst_90 = arith.constant 1.000000e+00 : f32
    %343 = vector.broadcast %cst_90 : f32 to vector<8x192xf32>
    %344 = arith.addf %343, %342 : vector<8x192xf32>
    %345 = arith.divf %343, %344 : vector<8x192xf32>
    %346 = vector.extract_strided_slice %339 {offsets = [0, 192], sizes = [8, 64], strides = [1, 1]} : vector<8x256xf32> to vector<8x64xf32>
    %347 = math.tanh %346 : vector<8x64xf32>
    %348 = vector.extract_strided_slice %345 {offsets = [0, 64], sizes = [8, 64], strides = [1, 1]} : vector<8x192xf32> to vector<8x64xf32>
    %349 = arith.mulf %348, %329 : vector<8x64xf32>
    %350 = vector.extract_strided_slice %345 {offsets = [0, 0], sizes = [8, 64], strides = [1, 1]} : vector<8x192xf32> to vector<8x64xf32>
    %351 = arith.mulf %350, %347 : vector<8x64xf32>
    %352 = arith.addf %349, %351 : vector<8x64xf32>
    %353 = vector.extract_strided_slice %345 {offsets = [0, 128], sizes = [8, 64], strides = [1, 1]} : vector<8x192xf32> to vector<8x64xf32>
    %354 = math.tanh %352 : vector<8x64xf32>
    %355 = arith.mulf %353, %354 : vector<8x64xf32>
    %c6_i32_91 = arith.constant 6 : i32
    %c8_i32_92 = arith.constant 8 : i32
    %356 = arith.muli %c6_i32_91, %c8_i32_92 : i32
    %357 = tpu.assume_multiple %356, 8 : i32
    %358 = arith.index_cast %357 : i32 to index
    %c0_93 = arith.constant 0 : index
    %359 = vector.load %arg11[%358, %c0_93] : memref<64x256xf32, #tpu.memory_space<vmem>>, vector<8x256xf32>
    %360 = arith.truncf %355 : vector<8x64xf32> to vector<8x64xbf16>
    %cst_94 = arith.constant dense<0.000000e+00> : vector<8x256xf32>
    %361 = tpu.matmul %360, %217, %cst_94 {dimension_numbers = #tpu.dot_dimension_numbers<[1], [0], [0], [1], [0, 0, 1, 1], [], []>} : vector<8x64xbf16>, vector<64x256xbf16>, vector<8x256xf32> -> vector<8x256xf32>
    %362 = arith.addf %359, %361 : vector<8x256xf32>
    %363 = vector.extract_strided_slice %362 {offsets = [0, 0], sizes = [8, 192], strides = [1, 1]} : vector<8x256xf32> to vector<8x192xf32>
    %364 = arith.negf %363 : vector<8x192xf32>
    %365 = math.exp %364 : vector<8x192xf32>
    %cst_95 = arith.constant 1.000000e+00 : f32
    %366 = vector.broadcast %cst_95 : f32 to vector<8x192xf32>
    %367 = arith.addf %366, %365 : vector<8x192xf32>
    %368 = arith.divf %366, %367 : vector<8x192xf32>
    %369 = vector.extract_strided_slice %362 {offsets = [0, 192], sizes = [8, 64], strides = [1, 1]} : vector<8x256xf32> to vector<8x64xf32>
    %370 = math.tanh %369 : vector<8x64xf32>
    %371 = vector.extract_strided_slice %368 {offsets = [0, 64], sizes = [8, 64], strides = [1, 1]} : vector<8x192xf32> to vector<8x64xf32>
    %372 = arith.mulf %371, %352 : vector<8x64xf32>
    %373 = vector.extract_strided_slice %368 {offsets = [0, 0], sizes = [8, 64], strides = [1, 1]} : vector<8x192xf32> to vector<8x64xf32>
    %374 = arith.mulf %373, %370 : vector<8x64xf32>
    %375 = arith.addf %372, %374 : vector<8x64xf32>
    %376 = vector.extract_strided_slice %368 {offsets = [0, 128], sizes = [8, 64], strides = [1, 1]} : vector<8x192xf32> to vector<8x64xf32>
    %377 = math.tanh %375 : vector<8x64xf32>
    %378 = arith.mulf %376, %377 : vector<8x64xf32>
    %c7_i32_96 = arith.constant 7 : i32
    %c8_i32_97 = arith.constant 8 : i32
    %379 = arith.muli %c7_i32_96, %c8_i32_97 : i32
    %380 = tpu.assume_multiple %379, 8 : i32
    %381 = arith.index_cast %380 : i32 to index
    %c0_98 = arith.constant 0 : index
    %382 = vector.load %arg11[%381, %c0_98] : memref<64x256xf32, #tpu.memory_space<vmem>>, vector<8x256xf32>
    %383 = arith.truncf %378 : vector<8x64xf32> to vector<8x64xbf16>
    %cst_99 = arith.constant dense<0.000000e+00> : vector<8x256xf32>
    %384 = tpu.matmul %383, %217, %cst_99 {dimension_numbers = #tpu.dot_dimension_numbers<[1], [0], [0], [1], [0, 0, 1, 1], [], []>} : vector<8x64xbf16>, vector<64x256xbf16>, vector<8x256xf32> -> vector<8x256xf32>
    %385 = arith.addf %382, %384 : vector<8x256xf32>
    %386 = vector.extract_strided_slice %385 {offsets = [0, 0], sizes = [8, 192], strides = [1, 1]} : vector<8x256xf32> to vector<8x192xf32>
    %387 = arith.negf %386 : vector<8x192xf32>
    %388 = math.exp %387 : vector<8x192xf32>
    %cst_100 = arith.constant 1.000000e+00 : f32
    %389 = vector.broadcast %cst_100 : f32 to vector<8x192xf32>
    %390 = arith.addf %389, %388 : vector<8x192xf32>
    %391 = arith.divf %389, %390 : vector<8x192xf32>
    %392 = vector.extract_strided_slice %385 {offsets = [0, 192], sizes = [8, 64], strides = [1, 1]} : vector<8x256xf32> to vector<8x64xf32>
    %393 = math.tanh %392 : vector<8x64xf32>
    %394 = vector.extract_strided_slice %391 {offsets = [0, 64], sizes = [8, 64], strides = [1, 1]} : vector<8x192xf32> to vector<8x64xf32>
    %395 = arith.mulf %394, %375 : vector<8x64xf32>
    %396 = vector.extract_strided_slice %391 {offsets = [0, 0], sizes = [8, 64], strides = [1, 1]} : vector<8x192xf32> to vector<8x64xf32>
    %397 = arith.mulf %396, %393 : vector<8x64xf32>
    %398 = arith.addf %395, %397 : vector<8x64xf32>
    %399 = vector.extract_strided_slice %391 {offsets = [0, 128], sizes = [8, 64], strides = [1, 1]} : vector<8x192xf32> to vector<8x64xf32>
    %400 = math.tanh %398 : vector<8x64xf32>
    %401 = arith.mulf %399, %400 : vector<8x64xf32>
    %c8_i32_101 = arith.constant 8 : i32
    %c0_102 = arith.constant 0 : index
    %c0_103 = arith.constant 0 : index
    %402 = vector.load %arg8[%c0_102, %c0_103] : memref<1x64xf32, #tpu.memory_space<vmem>>, vector<1x64xf32>
    %403 = vector.broadcast %402 : vector<1x64xf32> to vector<8x64xf32>
    %404 = arith.mulf %401, %403 : vector<8x64xf32>
    %cst_104 = arith.constant dense<0.000000e+00> : vector<8xf32>
    %405 = vector.multi_reduction <add>, %404, %cst_104 [1] : vector<8x64xf32> to vector<8xf32>
    %406 = vector.shape_cast %405 : vector<8xf32> to vector<8x1xf32>
    %c0_105 = arith.constant 0 : index
    %c0_106 = arith.constant 0 : index
    %407 = vector.load %arg9[%c0_105, %c0_106] : memref<1x1xf32, #tpu.memory_space<vmem>>, vector<1x1xf32>
    %408 = vector.broadcast %407 : vector<1x1xf32> to vector<8x1xf32>
    %409 = arith.addf %406, %408 : vector<8x1xf32>
    %c0_107 = arith.constant 0 : index
    %c0_108 = arith.constant 0 : index
    %410 = vector.load %arg10[%c0_107, %c0_108] : memref<8x1xf32, #tpu.memory_space<vmem>>, vector<8x1xf32>
    tpu.vector_store %arg10[%c0_107, %c0_108], %409 {strides = array<i32>} : memref<8x1xf32, #tpu.memory_space<vmem>>, vector<8x1xf32>,
    return
  }
  func.func @transform_0(%arg0: i32) -> (i32, i32) {
    %c0_i32 = arith.constant 0 : i32
    %c0_i32_0 = arith.constant 0 : i32
    %c0_i32_1 = arith.constant 0 : i32
    return %c0_i32, %c0_i32_0 : i32, i32
  }
  func.func @transform_1(%arg0: i32) -> (i32, i32) {
    %c0_i32 = arith.constant 0 : i32
    %c0_i32_0 = arith.constant 0 : i32
    %c0_i32_1 = arith.constant 0 : i32
    return %c0_i32, %c0_i32_0 : i32, i32
  }
  func.func @transform_2(%arg0: i32) -> (i32, i32) {
    %c0_i32 = arith.constant 0 : i32
    %c0_i32_0 = arith.constant 0 : i32
    %c0_i32_1 = arith.constant 0 : i32
    return %c0_i32, %c0_i32_0 : i32, i32
  }
  func.func @transform_3(%arg0: i32) -> (i32, i32) {
    %c0_i32 = arith.constant 0 : i32
    %c0_i32_0 = arith.constant 0 : i32
    %c0_i32_1 = arith.constant 0 : i32
    return %c0_i32, %c0_i32_0 : i32, i32
  }
  func.func @transform_4(%arg0: i32) -> (i32, i32) {
    %c0_i32 = arith.constant 0 : i32
    %c0_i32_0 = arith.constant 0 : i32
    %c0_i32_1 = arith.constant 0 : i32
    return %c0_i32, %c0_i32_0 : i32, i32
  }
  func.func @transform_5(%arg0: i32) -> (i32, i32) {
    %c0_i32 = arith.constant 0 : i32
    %c0_i32_0 = arith.constant 0 : i32
    %c0_i32_1 = arith.constant 0 : i32
    return %c0_i32, %c0_i32_0 : i32, i32
  }
  func.func @transform_6(%arg0: i32) -> (i32, i32) {
    %c0_i32 = arith.constant 0 : i32
    %c0_i32_0 = arith.constant 0 : i32
    %c0_i32_1 = arith.constant 0 : i32
    return %c0_i32, %c0_i32_0 : i32, i32
  }
  func.func @transform_7(%arg0: i32) -> (i32, i32) {
    %c0_i32 = arith.constant 0 : i32
    %c0_i32_0 = arith.constant 0 : i32
    %c0_i32_1 = arith.constant 0 : i32
    return %c0_i32, %c0_i32_0 : i32, i32
  }
  func.func @transform_8(%arg0: i32) -> (i32, i32) {
    %c0_i32 = arith.constant 0 : i32
    %c0_i32_0 = arith.constant 0 : i32
    %c0_i32_1 = arith.constant 0 : i32
    return %c0_i32, %c0_i32_0 : i32, i32
  }
  func.func @transform_9(%arg0: i32) -> (i32, i32) {
    %c0_i32 = arith.constant 0 : i32
    %c0_i32_0 = arith.constant 0 : i32
    %c0_i32_1 = arith.constant 0 : i32
    return %c0_i32, %c0_i32_0 : i32, i32
  }
}

</mosaic_0001>

<bundles_post_ra>
// kernel: tpu_custom_call.1
= control target key start
LH: loop header
LB: loop body
LE: loop exit
PB: predicated region body
PF: predicated region fallthrough
CT: control target
= control target key end

     0   :  { %s2698_s0 = inlined_call_operand.vmem [shape: bf16[64,8], index: 0, kind: input, shape index: {}]   ;;  %s2699_s1 = inlined_call_operand.vmem [shape: bf16[8,256], index: 1, kind: input, shape index: {}]   ;;  %s2700_s2 = inlined_call_operand.hbm [shape: bf16[64,256], index: 2, kind: input, shape index: {}]   ;;  %s2701_s3 = inlined_call_operand.vmem [shape: f32[1,256], index: 3, kind: input, shape index: {}]   ;;  %s2702_s4 = inlined_call_operand.hbm [shape: bf16[64,256], index: 4, kind: input, shape index: {}]   ;;  %s2703_s5 = inlined_call_operand.hbm [shape: bf16[64,256], index: 5, kind: input, shape index: {}]   ;;  %s2704_s6 = inlined_call_operand.vmem [shape: f32[1,256], index: 6, kind: input, shape index: {}]   ;;  %s2705_s7 = inlined_call_operand.vmem [shape: f32[1,64], index: 7, kind: input, shape index: {}]   ;;  %s2706_s8 = inlined_call_operand.<no memory space> [shape: f32[1,1], index: 8, kind: input, shape index: {}]   ;;  %s2707_s9 = inlined_call_operand.vmem [shape: f32[8,1], index: 9, kind: output, shape index: {}]  }
   0x1   :  { %v14_v0 = vstv %s2706_s8 }
   0x2   :  { %15 = vst [vmem:[#allocation4] sm:$0x1] %v14_v0 }
   0x3   :  { %16 = vsyncpa [#allocation6], 0 }
   0x4   :  { %17 = vsyncpa [#allocation8], 0  ;;  %s2225_s11 = smov [#allocation7]   ;;  %s2226_s13 = smov [#allocation5]  }
   0x5   :  { %s41_s12 = sshll.u32 %s2225_s11, 4  ;;  %s27_s14 = sshll.u32 %s2226_s13, 4  ;;  %s42_s12 = int_to_ptr.vmem [resolvable:$true] %s41_s12  ;;  %s28_s14 = int_to_ptr.vmem [resolvable:$true] %s27_s14 }
   0x6   :  { %s2169_s15 = scalar_lea.vmem %s42_s12, 1024  ;;  %p2174_p1 = scmp.lt.s32.totalorder %s42_s12, %s42_s12 }
   0x7   :  { %p2170_p0 = scmp.ne.s32.totalorder %s42_s12, %s2169_s15  ;;  %p2175_p2 = scmp.lt.s32.totalorder %s2169_s15, %s2169_s15 }
   0x9   :  { %p2176_p3 = por %p2175_p2, %p2174_p1 }
   0xb   :  { %p2177_p4 = pnand %p2176_p3, %p2170_p0 }
   0xd   :  { %2180 = shalt.err (!%p2177_p4)
}
   0xe   :  { %s2227_s16 = smov 128   ;;  %s2228_s17 = smov 8  }
   0xf   :  { %47 = dma.hbm_to_vmem [thread:$0]  %s2702_s4, 1024, %s42_s12, [#allocation8], %s2227_s16, %s2227_s16, %s2228_s17  }
  0x10   :  { %s2189_s19 = scalar_lea.vmem %s28_s14, 1024  ;;  %p2194_p6 = scmp.lt.s32.totalorder %s28_s14, %s28_s14 }
  0x11   :  { %p2190_p5 = scmp.ne.s32.totalorder %s28_s14, %s2189_s19  ;;  %p2195_p7 = scmp.lt.s32.totalorder %s2189_s19, %s2189_s19 }
  0x13   :  { %p2196_p8 = por %p2195_p7, %p2194_p6 }
  0x15   :  { %p2197_p9 = pnand %p2196_p8, %p2190_p5 }
  0x17   :  { %2200 = shalt.err (!%p2197_p9)
}
  0x18   :  { %33 = dma.hbm_to_vmem [thread:$0]  %s2700_s2, 1024, %s28_s14, [#allocation6], %s2227_s16, %s2227_s16, %s2228_s17  }
  0x19   :  { %s2229_s22 = smov [#allocation9]  }
  0x1a   :  { %s53_s23 = sshll.u32 %s2229_s22, 4  ;;  %s54_s23 = int_to_ptr.vmem [resolvable:$true] %s53_s23 }
  0x1b   :  { %s2209_s24 = scalar_lea.vmem %s54_s23, 1024  ;;  %p2214_p11 = scmp.lt.s32.totalorder %s54_s23, %s54_s23 }
  0x1c   :  { %p2210_p10 = scmp.ne.s32.totalorder %s54_s23, %s2209_s24  ;;  %p2215_p12 = scmp.lt.s32.totalorder %s2209_s24, %s2209_s24 }
  0x1e   :  { %p2216_p13 = por %p2215_p12, %p2214_p11 }
  0x20   :  { %p2217_p0 = pnand %p2216_p13, %p2210_p10 }
  0x22   :  { %2220 = shalt.err (!%p2217_p0)
}
  0x23   :  { %59 = dma.hbm_to_vmem [thread:$0]  %s2703_s5, 1024, %s54_s23, [#allocation8], %s2227_s16, %s2227_s16, %s2228_s17  }
  0x24   :  { %2221 = dma.done.wait [#allocation6], 1024  }
  0x25   :  { %2222 = vsyncadd [#allocation6], 4294966272 }
  0x26   :  { %2223 = dma.done.wait [#allocation8], 2048  }
  0x27   :  { %2224 = vsyncadd [#allocation8], 4294965248  ;;  %v2230_v1 = vmov 0   ;;  %v2296_v2 = vld [vmem:[#allocation5 + $0x34] ss:$8 sps:$4 sm:$0xff]   ;;  %vm135_vm0 = vcmask 1043456   ;;  %v87_v15 = vlaneseq }
  0x28   :  { %174 = vmatprep.mubr.bf16.mxu0 %v2230_v1  ;;  %320 = vmatprep.mubr.bf16.mxu1 %v2230_v1  ;;  %v2298_v3 = vld [vmem:[#allocation5 + $0x30] ss:$8 sps:$4 sm:$0xff]   ;;  %v84_v4 = vld [vmem:[%s2699_s1] sm:$0xff]  ;;  %vm122_vm1 = vcmask 64512   ;;  %vm284_vm2 = vcmask 523264   ;;  %vm1818_vm3 = vcmask 7168  }
  0x29   :  { %296 = vmatprep.subr.bf16.mxu1 %v2296_v2  ;;  %v1838_v5 = vcombine.high %v84_v4, %v84_v4  ;;  %v2304_v6 = vld [vmem:[#allocation5 + $0x24] ss:$8 sps:$4 sm:$0xff]   ;;  %v1837_v7 = vcombine.low %v84_v4, %v84_v4  ;;  %v2306_v8 = vld [vmem:[#allocation5 + $0x20] ss:$8 sps:$4 sm:$0xff]   ;;  %v2313_v11 = vld [vmem:[#allocation5 + $0x14] ss:$8 sps:$4 sm:$0xff]  }
  0x2a   :  { %297 = vmatpush1.bf16.msra.mxu1 %v2298_v3  ;;  %v1935_v9 = vld [vmem:[%s2698_s0] sm:$0xff]   ;;  %v2315_v12 = vld [vmem:[#allocation5 + $0x10] ss:$8 sps:$4 sm:$0xff]   ;;  %v2348_v16 = vshrl.u32 %v87_v15, 7 }
  0x2b   :  { %1839 = vmatprep.subr.msk.bf16.mxu0 %vm135_vm0, %v1838_v5  ;;  %298 = vmatprep.subr.bf16.mxu1 %v2304_v6  ;;  %v137_v10 = vsel %vm135_vm0, %v1837_v7, 0  ;;  %v2317_v13 = vld [vmem:[#allocation5 + $0x4] ss:$8 sps:$4 sm:$0xff]   ;;  %v2323_v14 = vld [vmem:[#allocation5] ss:$8 sps:$4 sm:$0xff]  }
  0x2c   :  { %157 = vmatpush1.bf16.msra.mxu0 %v137_v10  ;;  %v89_v17 = vsub.s32 0, %v2348_v16  ;;  %v85_v18 = vld [vmem:[%s2701_s3] sm:$0x3]  ;;  %v93_v20 = vsub.s32 1, %v2348_v16  ;;  %s2231_s3 = smov 64   ;;  %v1942_v7 = vld [vmem:[%s2698_s0 + $0x8] sm:$0xff]  }
  0x2d   :  { %463 = vmatprep.subr.bf16.mxu0 %v2296_v2  ;;  %v1944_v10 = vld [vmem:[%s2698_s0 + $0x18] sm:$0xff]  }
  0x2e   :  { %299 = vmatpush1.bf16.msra.mxu1 %v2306_v8  ;;  %v2356_v19 = vrot.slane %v85_v18, %v89_v17  ;;  %v2362_v23 = vrot.slane %v85_v18, %v93_v20 }
  0x2f   :  { %1840 = vmatmul.mubr.msk.bf16.vlgmr.msra.gmra.mxu0 %vm122_vm1, %v1935_v9  ;;  %300 = vmatprep.subr.bf16.mxu1 %v2313_v11  ;;  %v1943_v9 = vld [vmem:[%s2698_s0 + $0x10] sm:$0xff]  }
  0x30   :  { %464 = vmatpush1.bf16.msra.mxu0 %v2298_v3  ;;  %184 = vmatprep.mubr.bf16.mxu0 %v2230_v1 }
  0x31   :  { %465 = vmatprep.subr.bf16.mxu0 %v2304_v6 }
  0x32   :  { %301 = vmatpush1.bf16.msra.mxu1 %v2315_v12 }
  0x33   :  { %302 = vmatprep.subr.bf16.mxu1 %v2317_v13 }
  0x34   :  { %466 = vmatpush1.bf16.msra.mxu0 %v2306_v8 }
  0x35   :  { %467 = vmatprep.subr.bf16.mxu0 %v2313_v11 }
  0x36   :  { %303 = vmatpush1.bf16.msra.mxu1 %v2323_v14 }
  0x37   :  { %379 = vmatprep.subr.bf16.mxu1 %v2296_v2  ;;  %1841 = vmatmul.mubr.msk.bf16.gmra.mxu0 %vm122_vm1, %v1942_v7 }
  0x38   :  { %468 = vmatpush1.bf16.msra.mxu0 %v2315_v12  ;;  %194 = vmatprep.mubr.bf16.mxu0 %v2230_v1 }
  0x39   :  { %321 = vmatmul.mubr.bf16.vlgmr.msra.gmra.mxu1 %v2230_v1  ;;  %469 = vmatprep.subr.bf16.mxu0 %v2317_v13 }
  0x3a   :  { %380 = vmatpush1.bf16.msra.mxu1 %v2298_v3  ;;  %403 = vmatprep.mubr.bf16.mxu1 %v2230_v1 }
  0x3b   :  { %381 = vmatprep.subr.bf16.mxu1 %v2304_v6 }
  0x3c   :  { %470 = vmatpush1.bf16.msra.mxu0 %v2323_v14 }
  0x3d   :  { %631 = vmatprep.subr.bf16.mxu0 %v2296_v2 }
  0x3e   :  { %382 = vmatpush1.bf16.msra.mxu1 %v2306_v8 }
  0x3f   :  { %383 = vmatprep.subr.bf16.mxu1 %v2313_v11  ;;  %1842 = vmatmul.mubr.msk.bf16.gmra.mxu0 %vm122_vm1, %v1943_v9 }
  0x40   :  { %204 = vmatprep.mubr.bf16.mxu0 %v2230_v1 }
  0x42   :  { %384 = vmatpush1.bf16.msra.mxu1 %v2315_v12 }
  0x43   :  { %385 = vmatprep.subr.bf16.mxu1 %v2317_v13 }
  0x46   :  { %386 = vmatpush1.bf16.msra.mxu1 %v2323_v14 }
  0x47   :  { %547 = vmatprep.subr.bf16.mxu1 %v2296_v2  ;;  %1843 = vmatmul.mubr.msk.bf16.gmra.mxu0 %vm122_vm1, %v1944_v10 }
  0x48   :  { %487 = vmatprep.mubr.bf16.mxu0 %v2230_v1 }
  0xef   :  { %v176_v21 = vpop.f32.mrf.mxu0 }
  0xf0   :  { %v177_v22 = vadd.f32 %v176_v21, %v2356_v19 }
  0xf1   :  { %v178_v24 = vpop.f32.mrf.mxu0 }
  0xf2   :  { %v179_v26 = vadd.f32 %v178_v24, %v2362_v23 }
  0xf3   :  { %v180_v50 = vpop.f32.mrf.mxu0 }
  0xf4   :  { %v181_v52 = vadd.f32 %v180_v50, %v2356_v19 }
  0xf5   :  { %v182_v51 = vpop.f32.mrf.mxu0 }
  0xf6   :  { %v183_v54 = vadd.f32 %v182_v51, %v2362_v23 }
  0xf9   :  { %v322_v25 = vpop.f32.mrf.mxu1 }
  0xfa   :  { %v329_v27 = vadd.f32 %v322_v25, %v177_v22 }
  0xfb   :  { %v324_v28 = vpop.f32.mrf.mxu1 }
  0xfc   :  { %v330_v29 = vadd.f32 %v324_v28, %v179_v26  ;;  %v1852_v33 = vmul.f32 -1.442695, %v329_v27 }
  0xfd   :  { %v326_v30 = vpop.f32.mrf.mxu1 }
  0xfe   :  { %1969 = vtanh.f32 %v330_v29  ;;  %v1853_v43 = vmul.f32 -1.442695, %v330_v29 }
  0xff   :  { %v327_v31 = vpop.f32.mrf.mxu1  ;;  %1971 = vpow2.f32 %v1852_v33 }
 0x100   :  { %v186_v31 = vpop.f32.mrf.mxu0 }
 0x10b   :  { %v1970_v32 = vpop.eup %1969 }
 0x10c   :  { %346 = vrot.lane.b32.xlu0 %v1970_v32, %s2231_s3  ;;  %v1972_v34 = vpop.eup %1971  ;;  %v188_v32 = vpop.f32.mrf.mxu0 }
 0x10d   :  { %v337_v35 = vadd.f32 1.0, %v1972_v34 }
 0x10e   :  { %v190_v33 = vpop.f32.mrf.mxu0 }
 0x10f   :  { %1973 = vrcp.f32 %v337_v35  ;;  %v191_v10 = vadd.f32 %v190_v33, %v2356_v19 }
 0x110   :  { %v192_v34 = vpop.f32.mrf.mxu0 }
 0x112   :  { %v2410_v35 = vpop.f32.mrf.mxu0 }
 0x11c   :  { %v1974_v36 = vpop.eup %1973 }
 0x11d   :  { %v344_v39 = vmul.f32 0.0, %v1974_v36 }
 0x17e   :  { %v347_v37 = vpop.permute.xlu0 %346 }
 0x17f   :  { %v349_v38 = vmul.f32 %v1974_v36, %v347_v37  ;;  %v2412_v36 = vpop.f32.mrf.mxu0 }
 0x181   :  { %351 = vrot.lane.b32.xlu0 %v349_v38, %s2231_s3  ;;  %v2414_v37 = vpop.f32.mrf.mxu0 }
 0x183   :  { %v2416_v38 = vpop.f32.mrf.mxu0 }
 0x1f3   :  { %v352_v40 = vpop.permute.xlu0 %351 }
 0x1f4   :  { %v354_v41 = vadd.f32 %v352_v40, %v344_v39  ;;  %v2418_v39 = vpop.f32.mrf.mxu0 }
 0x1f6   :  { %1975 = vtanh.f32 %v354_v41  ;;  %v2420_v40 = vpop.f32.mrf.mxu0 }
 0x1f7   :  { %1977 = vpow2.f32 %v1853_v43  ;;  %v187_v43 = vadd.f32 %v186_v31, %v2356_v19 }
 0x203   :  { %v1976_v42 = vpop.eup %1975 }
 0x204   :  { %357 = vrot.lane.b32.xlu1 %v1976_v42, %s2231_s3  ;;  %v1978_v44 = vpop.eup %1977 }
 0x205   :  { %v338_v45 = vadd.f32 1.0, %v1978_v44 }
 0x207   :  { %1979 = vrcp.f32 %v338_v45  ;;  %v189_v45 = vadd.f32 %v188_v32, %v2362_v23 }
 0x214   :  { %v1980_v46 = vpop.eup %1979 }
 0x276   :  { %v358_v47 = vpop.permute.xlu1 %357 }
 0x277   :  { %v360_v48 = vmul.f32 %v1980_v46, %v358_v47 }
 0x279   :  { %361 = vst.msk [vmem:[#allocation3] sm:$0xff] %vm284_vm2, %v360_v48  ;;  %v367_v49 = vpack.c.bf16 %v360_v48, %v360_v48 }
 0x27b   :  { %1854 = vmatmul.mubr.msk.bf16.vlgmr.msra.gmra.mxu1 %vm284_vm2, %v367_v49 }
 0x27c   :  { %548 = vmatpush1.bf16.msra.mxu1 %v2298_v3  ;;  %571 = vmatprep.mubr.bf16.mxu1 %v2230_v1 }
 0x27d   :  { %549 = vmatprep.subr.bf16.mxu1 %v2304_v6 }
 0x280   :  { %550 = vmatpush1.bf16.msra.mxu1 %v2306_v8 }
 0x281   :  { %551 = vmatprep.subr.bf16.mxu1 %v2313_v11 }
 0x284   :  { %552 = vmatpush1.bf16.msra.mxu1 %v2315_v12 }
 0x285   :  { %553 = vmatprep.subr.bf16.mxu1 %v2317_v13 }
 0x288   :  { %554 = vmatpush1.bf16.msra.mxu1 %v2323_v14 }
 0x289   :  { %715 = vmatprep.subr.bf16.mxu1 %v2296_v2 }
 0x33b   :  { %v405_v53 = vpop.f32.mrf.mxu1 }
 0x33c   :  { %v412_v55 = vadd.f32 %v405_v53, %v181_v52 }
 0x33d   :  { %v407_v56 = vpop.f32.mrf.mxu1 }
 0x33e   :  { %v413_v57 = vadd.f32 %v407_v56, %v183_v54  ;;  %v1855_v61 = vmul.f32 -1.442695, %v412_v55 }
 0x33f   :  { %v409_v58 = vpop.f32.mrf.mxu1 }
 0x340   :  { %1981 = vtanh.f32 %v413_v57  ;;  %v1856_v24 = vmul.f32 -1.442695, %v413_v57 }
 0x341   :  { %v410_v59 = vpop.f32.mrf.mxu1  ;;  %1983 = vpow2.f32 %v1855_v61 }
 0x34d   :  { %v1982_v60 = vpop.eup %1981 }
 0x34e   :  { %429 = vrot.lane.b32.xlu1 %v1982_v60, %s2231_s3  ;;  %v1984_v62 = vpop.eup %1983 }
 0x34f   :  { %v420_v63 = vadd.f32 1.0, %v1984_v62 }
 0x351   :  { %1985 = vrcp.f32 %v420_v63 }
 0x35e   :  { %v1986_v0 = vpop.eup %1985 }
 0x35f   :  { %v427_v15 = vmul.f32 %v1986_v0, %v354_v41  ;;  %v2422_v41 = vpop.f32.mrf.mxu0 }
 0x361   :  { %v2424_v42 = vpop.f32.mrf.mxu0 }
 0x362   :  { %v213_v16 = vadd.f32 %v2424_v42, %v2362_v23 }
 0x3c0   :  { %v430_v4 = vpop.permute.xlu1 %429 }
 0x3c1   :  { %v432_v5 = vmul.f32 %v1986_v0, %v430_v4 }
 0x3c3   :  { %434 = vrot.lane.b32.xlu0 %v432_v5, %s2231_s3 }
 0x435   :  { %v435_v18 = vpop.permute.xlu0 %434 }
 0x436   :  { %v437_v21 = vadd.f32 %v435_v18, %v427_v15  ;;  %v193_v18 = vadd.f32 %v192_v34, %v2362_v23 }
 0x438   :  { %1987 = vtanh.f32 %v437_v21 }
 0x439   :  { %1989 = vpow2.f32 %v1856_v24 }
 0x445   :  { %v1988_v22 = vpop.eup %1987 }
 0x446   :  { %440 = vrot.lane.b32.xlu1 %v1988_v22, %s2231_s3  ;;  %v1990_v25 = vpop.eup %1989 }
 0x447   :  { %v421_v26 = vadd.f32 1.0, %v1990_v25 }
 0x449   :  { %1991 = vrcp.f32 %v421_v26 }
 0x456   :  { %v1992_v27 = vpop.eup %1991 }
 0x4b8   :  { %v441_v28 = vpop.permute.xlu1 %440 }
 0x4b9   :  { %v443_v29 = vmul.f32 %v1992_v27, %v441_v28 }
 0x4bb   :  { %445 = vst.msk [vmem:[#allocation3 + $0x8] sm:$0xff] %vm284_vm2, %v443_v29  ;;  %v451_v30 = vpack.c.bf16 %v443_v29, %v443_v29 }
 0x4bd   :  { %1857 = vmatmul.mubr.msk.bf16.vlgmr.msra.gmra.mxu0 %vm284_vm2, %v451_v30 }
 0x4be   :  { %632 = vmatpush1.bf16.msra.mxu0 %v2298_v3  ;;  %655 = vmatprep.mubr.bf16.mxu0 %v2230_v1 }
 0x4bf   :  { %633 = vmatprep.subr.bf16.mxu0 %v2304_v6 }
 0x4c2   :  { %634 = vmatpush1.bf16.msra.mxu0 %v2306_v8 }
 0x4c3   :  { %635 = vmatprep.subr.bf16.mxu0 %v2313_v11 }
 0x4c6   :  { %636 = vmatpush1.bf16.msra.mxu0 %v2315_v12 }
 0x4c7   :  { %637 = vmatprep.subr.bf16.mxu0 %v2317_v13 }
 0x4ca   :  { %638 = vmatpush1.bf16.msra.mxu0 %v2323_v14 }
 0x4cb   :  { %799 = vmatprep.subr.bf16.mxu0 %v2296_v2 }
 0x57d   :  { %v489_v44 = vpop.f32.mrf.mxu0 }
 0x57e   :  { %v496_v46 = vadd.f32 %v489_v44, %v187_v43 }
 0x57f   :  { %v491_v47 = vpop.f32.mrf.mxu0 }
 0x580   :  { %v497_v48 = vadd.f32 %v491_v47, %v189_v45  ;;  %v1858_v52 = vmul.f32 -1.442695, %v496_v46 }
 0x581   :  { %v493_v49 = vpop.f32.mrf.mxu0 }
 0x582   :  { %1993 = vtanh.f32 %v497_v48  ;;  %v1859_v62 = vmul.f32 -1.442695, %v497_v48 }
 0x583   :  { %v494_v50 = vpop.f32.mrf.mxu0  ;;  %1995 = vpow2.f32 %v1858_v52  ;;  %v197_v52 = vadd.f32 %v2410_v35, %v2356_v19 }
 0x58f   :  { %v1994_v51 = vpop.eup %1993 }
 0x590   :  { %513 = vrot.lane.b32.xlu0 %v1994_v51, %s2231_s3  ;;  %v1996_v53 = vpop.eup %1995 }
 0x591   :  { %v504_v54 = vadd.f32 1.0, %v1996_v53 }
 0x593   :  { %1997 = vrcp.f32 %v504_v54  ;;  %v199_v54 = vadd.f32 %v2412_v36, %v2362_v23 }
 0x5a0   :  { %v1998_v55 = vpop.eup %1997 }
 0x5a1   :  { %v511_v58 = vmul.f32 %v1998_v55, %v437_v21 }
 0x602   :  { %v514_v56 = vpop.permute.xlu0 %513 }
 0x603   :  { %v516_v57 = vmul.f32 %v1998_v55, %v514_v56 }
 0x605   :  { %518 = vrot.lane.b32.xlu1 %v516_v57, %s2231_s3 }
 0x677   :  { %v519_v59 = vpop.permute.xlu1 %518 }
 0x678   :  { %v521_v60 = vadd.f32 %v519_v59, %v511_v58 }
 0x67a   :  { %1999 = vtanh.f32 %v521_v60 }
 0x67b   :  { %2001 = vpow2.f32 %v1859_v62 }
 0x687   :  { %v2000_v61 = vpop.eup %1999 }
 0x688   :  { %524 = vrot.lane.b32.xlu0 %v2000_v61, %s2231_s3  ;;  %v2002_v63 = vpop.eup %2001 }
 0x689   :  { %v505_v0 = vadd.f32 1.0, %v2002_v63 }
 0x68b   :  { %2003 = vrcp.f32 %v505_v0 }
 0x698   :  { %v2004_v4 = vpop.eup %2003 }
 0x6fa   :  { %v525_v5 = vpop.permute.xlu0 %524 }
 0x6fb   :  { %v527_v7 = vmul.f32 %v2004_v4, %v525_v5 }
 0x6fd   :  { %529 = vst.msk [vmem:[#allocation3 + $0x10] sm:$0xff] %vm284_vm2, %v527_v7  ;;  %v535_v9 = vpack.c.bf16 %v527_v7, %v527_v7 }
 0x6ff   :  { %1860 = vmatmul.mubr.msk.bf16.vlgmr.msra.gmra.mxu1 %vm284_vm2, %v535_v9 }
 0x700   :  { %716 = vmatpush1.bf16.msra.mxu1 %v2298_v3  ;;  %739 = vmatprep.mubr.bf16.mxu1 %v2230_v1 }
 0x701   :  { %717 = vmatprep.subr.bf16.mxu1 %v2304_v6 }
 0x704   :  { %718 = vmatpush1.bf16.msra.mxu1 %v2306_v8 }
 0x705   :  { %719 = vmatprep.subr.bf16.mxu1 %v2313_v11 }
 0x708   :  { %720 = vmatpush1.bf16.msra.mxu1 %v2315_v12 }
 0x709   :  { %721 = vmatprep.subr.bf16.mxu1 %v2317_v13 }
 0x70c   :  { %722 = vmatpush1.bf16.msra.mxu1 %v2323_v14 }
 0x70d   :  { %883 = vmatprep.subr.bf16.mxu1 %v2296_v2 }
 0x7bf   :  { %v573_v15 = vpop.f32.mrf.mxu1 }
 0x7c0   :  { %v580_v21 = vadd.f32 %v573_v15, %v191_v10 }
 0x7c1   :  { %v575_v22 = vpop.f32.mrf.mxu1 }
 0x7c2   :  { %v581_v24 = vadd.f32 %v575_v22, %v193_v18  ;;  %v1861_v28 = vmul.f32 -1.442695, %v580_v21 }
 0x7c3   :  { %v577_v25 = vpop.f32.mrf.mxu1 }
 0x7c4   :  { %2005 = vtanh.f32 %v581_v24  ;;  %v1862_v45 = vmul.f32 -1.442695, %v581_v24 }
 0x7c5   :  { %v578_v26 = vpop.f32.mrf.mxu1  ;;  %2007 = vpow2.f32 %v1861_v28 }
 0x7c6   :  { %v201_v26 = vadd.f32 %v2414_v37, %v2356_v19 }
 0x7d1   :  { %v2006_v27 = vpop.eup %2005 }
 0x7d2   :  { %597 = vrot.lane.b32.xlu1 %v2006_v27, %s2231_s3  ;;  %v2008_v29 = vpop.eup %2007 }
 0x7d3   :  { %v588_v30 = vadd.f32 1.0, %v2008_v29 }
 0x7d5   :  { %2009 = vrcp.f32 %v588_v30 }
 0x7e2   :  { %v2010_v2 = vpop.eup %2009 }
 0x7e3   :  { %v595_v33 = vmul.f32 %v2010_v2, %v521_v60 }
 0x844   :  { %v598_v31 = vpop.permute.xlu1 %597 }
 0x845   :  { %v600_v32 = vmul.f32 %v2010_v2, %v598_v31 }
 0x847   :  { %602 = vrot.lane.b32.xlu0 %v600_v32, %s2231_s3 }
 0x8b9   :  { %v603_v34 = vpop.permute.xlu0 %602 }
 0x8ba   :  { %v605_v43 = vadd.f32 %v603_v34, %v595_v33  ;;  %v1947_v34 = vld [vmem:[#allocation7 + $0x34] ss:$8 sps:$4 sm:$0xff]  }
 0x8bc   :  { %2011 = vtanh.f32 %v605_v43 }
 0x8bd   :  { %2013 = vpow2.f32 %v1862_v45 }
 0x8c9   :  { %v2012_v44 = vpop.eup %2011 }
 0x8ca   :  { %608 = vrot.lane.b32.xlu1 %v2012_v44, %s2231_s3  ;;  %v2014_v46 = vpop.eup %2013 }
 0x8cb   :  { %v589_v47 = vadd.f32 1.0, %v2014_v46 }
 0x8cd   :  { %2015 = vrcp.f32 %v589_v47 }
 0x8da   :  { %v2016_v48 = vpop.eup %2015 }
 0x93c   :  { %v609_v49 = vpop.permute.xlu1 %608 }
 0x93d   :  { %v611_v50 = vmul.f32 %v2016_v48, %v609_v49 }
 0x93f   :  { %613 = vst.msk [vmem:[#allocation3 + $0x18] sm:$0xff] %vm284_vm2, %v611_v50  ;;  %v619_v51 = vpack.c.bf16 %v611_v50, %v611_v50  ;;  %v1945_v50 = vld [vmem:[#allocation7 + $0x30] ss:$8 sps:$4 sm:$0xff]  }
 0x941   :  { %1863 = vmatmul.mubr.msk.bf16.vlgmr.msra.gmra.mxu0 %vm284_vm2, %v619_v51 }
 0x942   :  { %800 = vmatpush1.bf16.msra.mxu0 %v2298_v3  ;;  %823 = vmatprep.mubr.bf16.mxu0 %v2230_v1 }
 0x943   :  { %801 = vmatprep.subr.bf16.mxu0 %v2304_v6 }
 0x946   :  { %802 = vmatpush1.bf16.msra.mxu0 %v2306_v8 }
 0x947   :  { %803 = vmatprep.subr.bf16.mxu0 %v2313_v11 }
 0x94a   :  { %804 = vmatpush1.bf16.msra.mxu0 %v2315_v12 }
 0x94b   :  { %805 = vmatprep.subr.bf16.mxu0 %v2317_v13 }
 0x94e   :  { %806 = vmatpush1.bf16.msra.mxu0 %v2323_v14 }
 0x94f   :  { %1042 = vmatprep.subr.bf16.mxu0 %v1947_v34 }
 0xa01   :  { %v657_v53 = vpop.f32.mrf.mxu0 }
 0xa02   :  { %v664_v55 = vadd.f32 %v657_v53, %v197_v52  ;;  %v1950_v52 = vld [vmem:[#allocation7 + $0x24] ss:$8 sps:$4 sm:$0xff]   ;;  %v1948_v53 = vld [vmem:[#allocation7 + $0x20] ss:$8 sps:$4 sm:$0xff]  }
 0xa03   :  { %v659_v56 = vpop.f32.mrf.mxu0 }
 0xa04   :  { %v665_v57 = vadd.f32 %v659_v56, %v199_v54  ;;  %v1864_v61 = vmul.f32 -1.442695, %v664_v55  ;;  %v1953_v54 = vld [vmem:[#allocation7 + $0x14] ss:$8 sps:$4 sm:$0xff]   ;;  %v1951_v55 = vld [vmem:[#allocation7 + $0x10] ss:$8 sps:$4 sm:$0xff]  }
 0xa05   :  { %v661_v58 = vpop.f32.mrf.mxu0  ;;  %v1956_v56 = vld [vmem:[#allocation7 + $0x4] ss:$8 sps:$4 sm:$0xff]  }
 0xa06   :  { %2017 = vtanh.f32 %v665_v57  ;;  %v1865_v10 = vmul.f32 -1.442695, %v665_v57  ;;  %v1954_v57 = vld [vmem:[#allocation7] ss:$8 sps:$4 sm:$0xff]  }
 0xa07   :  { %v662_v59 = vpop.f32.mrf.mxu0  ;;  %2019 = vpow2.f32 %v1864_v61  ;;  %v951_v58 = vld [vmem:[#allocation3 + $0x8] sm:$0xff]  ;;  %v953_v61 = vld [vmem:[#allocation3 + $0x18] sm:$0xff] }
 0xa08   :  { %v950_v59 = vld [vmem:[#allocation3] sm:$0xff] }
 0xa13   :  { %v2018_v60 = vpop.eup %2017 }
 0xa14   :  { %681 = vrot.lane.b32.xlu0 %v2018_v60, %s2231_s3  ;;  %v2020_v62 = vpop.eup %2019  ;;  %v958_v60 = vpack.c.bf16 %v951_v58, %v950_v59 }
 0xa15   :  { %v672_v63 = vadd.f32 1.0, %v2020_v62  ;;  %v952_v62 = vld [vmem:[#allocation3 + $0x10] sm:$0xff] }
 0xa17   :  { %2021 = vrcp.f32 %v672_v63  ;;  %v959_v63 = vpack.c.bf16 %v953_v61, %v952_v62 }
 0xa24   :  { %v2022_v0 = vpop.eup %2021 }
 0xa25   :  { %v679_v36 = vmul.f32 %v2022_v0, %v605_v43 }
 0xa86   :  { %v682_v35 = vpop.permute.xlu0 %681 }
 0xa87   :  { %v684_v4 = vmul.f32 %v2022_v0, %v682_v35 }
 0xa89   :  { %686 = vrot.lane.b32.xlu1 %v684_v4, %s2231_s3 }
 0xafb   :  { %v687_v5 = vpop.permute.xlu1 %686 }
 0xafc   :  { %v689_v7 = vadd.f32 %v687_v5, %v679_v36  ;;  %v207_v36 = vadd.f32 %v2418_v39, %v2356_v19 }
 0xafe   :  { %2023 = vtanh.f32 %v689_v7 }
 0xaff   :  { %2025 = vpow2.f32 %v1865_v10 }
 0xb0b   :  { %v2024_v9 = vpop.eup %2023 }
 0xb0c   :  { %692 = vrot.lane.b32.xlu0 %v2024_v9, %s2231_s3  ;;  %v2026_v15 = vpop.eup %2025 }
 0xb0d   :  { %v673_v18 = vadd.f32 1.0, %v2026_v15 }
 0xb0f   :  { %2027 = vrcp.f32 %v673_v18 }
 0xb1c   :  { %v2028_v21 = vpop.eup %2027 }
 0xb7e   :  { %v693_v22 = vpop.permute.xlu0 %692 }
 0xb7f   :  { %v695_v24 = vmul.f32 %v2028_v21, %v693_v22 }
 0xb81   :  { %697 = vst.msk [vmem:[#allocation3 + $0x20] sm:$0xff] %vm284_vm2, %v695_v24  ;;  %v703_v25 = vpack.c.bf16 %v695_v24, %v695_v24 }
 0xb83   :  { %1866 = vmatmul.mubr.msk.bf16.vlgmr.msra.gmra.mxu1 %vm284_vm2, %v703_v25 }
 0xb84   :  { %884 = vmatpush1.bf16.msra.mxu1 %v2298_v3  ;;  %907 = vmatprep.mubr.bf16.mxu1 %v2230_v1  ;;  %v203_v3 = vadd.f32 %v2416_v38, %v2362_v23 }
 0xb85   :  { %885 = vmatprep.subr.bf16.mxu1 %v2304_v6 }
 0xb88   :  { %886 = vmatpush1.bf16.msra.mxu1 %v2306_v8  ;;  %v954_v35 = vld [vmem:[#allocation3 + $0x20] sm:$0xff] }
 0xb89   :  { %887 = vmatprep.subr.bf16.mxu1 %v2313_v11 }
 0xb8c   :  { %888 = vmatpush1.bf16.msra.mxu1 %v2315_v12 }
 0xb8d   :  { %889 = vmatprep.subr.bf16.mxu1 %v2317_v13 }
 0xb90   :  { %890 = vmatpush1.bf16.msra.mxu1 %v2323_v14 }
 0xc43   :  { %v741_v27 = vpop.f32.mrf.mxu1 }
 0xc44   :  { %v748_v28 = vadd.f32 %v741_v27, %v201_v26 }
 0xc45   :  { %v743_v29 = vpop.f32.mrf.mxu1 }
 0xc46   :  { %v749_v6 = vadd.f32 %v743_v29, %v203_v3  ;;  %v1867_v12 = vmul.f32 -1.442695, %v748_v28 }
 0xc47   :  { %v745_v30 = vpop.f32.mrf.mxu1 }
 0xc48   :  { %2029 = vtanh.f32 %v749_v6  ;;  %v1868_v44 = vmul.f32 -1.442695, %v749_v6  ;;  %v2503_v6 = vld [vmem:[#allocation9 + $0x34] ss:$8 sps:$4 sm:$0xff]   ;;  %v2505_v30 = vld [vmem:[#allocation9 + $0x30] ss:$8 sps:$4 sm:$0xff]  }
 0xc49   :  { %v746_v8 = vpop.f32.mrf.mxu1  ;;  %2031 = vpow2.f32 %v1867_v12  ;;  %1181 = vmatprep.subr.bf16.mxu1 %v2503_v6  ;;  %v2516_v12 = vld [vmem:[#allocation9 + $0x14] ss:$8 sps:$4 sm:$0xff]  }
 0xc4a   :  { %v2510_v8 = vld [vmem:[#allocation9 + $0x24] ss:$8 sps:$4 sm:$0xff]  }
 0xc55   :  { %v2030_v11 = vpop.eup %2029 }
 0xc56   :  { %765 = vrot.lane.b32.xlu1 %v2030_v11, %s2231_s3  ;;  %v2032_v13 = vpop.eup %2031  ;;  %v2512_v11 = vld [vmem:[#allocation9 + $0x20] ss:$8 sps:$4 sm:$0xff]  }
 0xc57   :  { %v756_v14 = vadd.f32 1.0, %v2032_v13  ;;  %v2518_v13 = vld [vmem:[#allocation9 + $0x10] ss:$8 sps:$4 sm:$0xff]  }
 0xc59   :  { %2033 = vrcp.f32 %v756_v14 }
 0xc66   :  { %v2034_v2 = vpop.eup %2033 }
 0xc67   :  { %v763_v38 = vmul.f32 %v2034_v2, %v689_v7  ;;  %v209_v7 = vadd.f32 %v2420_v40, %v2362_v23 }
 0xcc8   :  { %v766_v37 = vpop.permute.xlu1 %765 }
 0xcc9   :  { %v768_v31 = vmul.f32 %v2034_v2, %v766_v37  ;;  %v2523_v2 = vld [vmem:[#allocation9 + $0x4] ss:$8 sps:$4 sm:$0xff]   ;;  %v2525_v37 = vld [vmem:[#allocation9] ss:$8 sps:$4 sm:$0xff]  }
 0xccb   :  { %770 = vrot.lane.b32.xlu0 %v768_v31, %s2231_s3 }
 0xd3d   :  { %v771_v32 = vpop.permute.xlu0 %770 }
 0xd3e   :  { %v2480_v33 = vadd.f32 %v771_v32, %v763_v38 }
 0xd40   :  { %2035 = vtanh.f32 %v2480_v33 }
 0xd41   :  { %2037 = vpow2.f32 %v1868_v44 }
 0xd4d   :  { %v2036_v43 = vpop.eup %2035 }
 0xd4e   :  { %776 = vrot.lane.b32.xlu1 %v2036_v43, %s2231_s3  ;;  %v2038_v45 = vpop.eup %2037 }
 0xd4f   :  { %v757_v46 = vadd.f32 1.0, %v2038_v45  ;;  %v211_v45 = vadd.f32 %v2422_v41, %v2356_v19 }
 0xd51   :  { %2039 = vrcp.f32 %v757_v46 }
 0xd5e   :  { %v2040_v47 = vpop.eup %2039 }
 0xdc0   :  { %v777_v48 = vpop.permute.xlu1 %776 }
 0xdc1   :  { %v779_v49 = vmul.f32 %v2040_v47, %v777_v48 }
 0xdc3   :  { %781 = vst.msk [vmem:[#allocation3 + $0x28] sm:$0xff] %vm284_vm2, %v779_v49  ;;  %v787_v51 = vpack.c.bf16 %v779_v49, %v779_v49 }
 0xdc5   :  { %1869 = vmatmul.mubr.msk.bf16.vlgmr.msra.gmra.mxu0 %vm284_vm2, %v787_v51  ;;  %v970_v51 = vld [vmem:[%s2704_s6] sm:$0x3] }
 0xdc6   :  { %1043 = vmatpush1.bf16.msra.mxu0 %v1945_v50  ;;  %1066 = vmatprep.mubr.bf16.mxu0 %v2230_v1 }
 0xdc7   :  { %1044 = vmatprep.subr.bf16.mxu0 %v1950_v52  ;;  %v2558_v52 = vrot.slane %v970_v51, %v89_v17 }
 0xdca   :  { %1045 = vmatpush1.bf16.msra.mxu0 %v1948_v53  ;;  %v955_v0 = vld [vmem:[#allocation3 + $0x28] sm:$0xff] }
 0xdcb   :  { %1046 = vmatprep.subr.bf16.mxu0 %v1953_v54  ;;  %v960_v4 = vpack.c.bf16 %v955_v0, %v954_v35 }
 0xdce   :  { %1047 = vmatpush1.bf16.msra.mxu0 %v1951_v55  ;;  %v2563_v55 = vrot.slane %v970_v51, %v93_v20 }
 0xdcf   :  { %1048 = vmatprep.subr.bf16.mxu0 %v1956_v56 }
 0xdd2   :  { %1049 = vmatpush1.bf16.msra.mxu0 %v1954_v57 }
 0xdd3   :  { %1339 = vmatprep.subr.bf16.mxu0 %v2503_v6 }
 0xdd5   :  { %1883 = vmatmul.mubr.msk.bf16.vlgmr.msra.gmra.mxu0 %vm284_vm2, %v958_v60 }
 0xdd6   :  { %1076 = vmatprep.mubr.bf16.mxu0 %v2230_v1  ;;  %1340 = vmatpush1.bf16.msra.mxu0 %v2505_v30 }
 0xdd7   :  { %1341 = vmatprep.subr.bf16.mxu0 %v2510_v8 }
 0xdda   :  { %1342 = vmatpush1.bf16.msra.mxu0 %v2512_v11 }
 0xddb   :  { %1343 = vmatprep.subr.bf16.mxu0 %v2516_v12 }
 0xddd   :  { %1884 = vmatmul.mubr.msk.bf16.gmra.mxu0 %vm284_vm2, %v959_v63 }
 0xdde   :  { %1086 = vmatprep.mubr.bf16.mxu0 %v2230_v1  ;;  %1344 = vmatpush1.bf16.msra.mxu0 %v2518_v13 }
 0xddf   :  { %1345 = vmatprep.subr.bf16.mxu0 %v2523_v2 }
 0xde2   :  { %1346 = vmatpush1.bf16.msra.mxu0 %v2525_v37 }
 0xde3   :  { %1497 = vmatprep.subr.bf16.mxu0 %v2503_v6 }
 0xde5   :  { %1885 = vmatmul.mubr.msk.bf16.gmra.mxu0 %vm284_vm2, %v960_v4 }
 0xde6   :  { %1096 = vmatprep.mubr.bf16.mxu0 %v2230_v1 }
 0xe85   :  { %v825_v5 = vpop.f32.mrf.mxu0 }
 0xe86   :  { %v832_v9 = vadd.f32 %v825_v5, %v207_v36 }
 0xe87   :  { %v827_v10 = vpop.f32.mrf.mxu0 }
 0xe88   :  { %v833_v15 = vadd.f32 %v827_v10, %v209_v7  ;;  %v1870_v24 = vmul.f32 -1.442695, %v832_v9 }
 0xe89   :  { %v829_v18 = vpop.f32.mrf.mxu0 }
 0xe8a   :  { %2041 = vtanh.f32 %v833_v15  ;;  %v1871_v31 = vmul.f32 -1.442695, %v833_v15 }
 0xe8b   :  { %v830_v21 = vpop.f32.mrf.mxu0  ;;  %2043 = vpow2.f32 %v1870_v24 }
 0xe95   :  { %v1068_v53 = vpop.f32.mrf.mxu0 }
 0xe96   :  { %v1069_v54 = vadd.f32 %v1068_v53, %v2558_v52 }
 0xe97   :  { %v2042_v22 = vpop.eup %2041  ;;  %v1070_v19 = vpop.f32.mrf.mxu0 }
 0xe98   :  { %849 = vrot.lane.b32.xlu0 %v2042_v22, %s2231_s3  ;;  %v2044_v25 = vpop.eup %2043  ;;  %v1071_v58 = vadd.f32 %v1070_v19, %v2563_v55 }
 0xe99   :  { %v840_v26 = vadd.f32 1.0, %v2044_v25 }
 0xe9b   :  { %2045 = vrcp.f32 %v840_v26 }
 0xea8   :  { %v2046_v27 = vpop.eup %2045 }
 0xea9   :  { %v847_v40 = vmul.f32 %v2046_v27, %v2480_v33 }
 0xf0a   :  { %v850_v39 = vpop.permute.xlu0 %849 }
 0xf0b   :  { %v852_v3 = vmul.f32 %v2046_v27, %v850_v39 }
 0xf0d   :  { %854 = vrot.lane.b32.xlu1 %v852_v3, %s2231_s3 }
 0xf7f   :  { %v855_v28 = vpop.permute.xlu1 %854 }
 0xf80   :  { %v2500_v29 = vadd.f32 %v855_v28, %v847_v40 }
 0xf82   :  { %2047 = vtanh.f32 %v2500_v29 }
 0xf83   :  { %2049 = vpow2.f32 %v1871_v31 }
 0xf8f   :  { %v2048_v14 = vpop.eup %2047 }
 0xf90   :  { %860 = vrot.lane.b32.xlu0 %v2048_v14, %s2231_s3  ;;  %v2050_v38 = vpop.eup %2049 }
 0xf91   :  { %v841_v32 = vadd.f32 1.0, %v2050_v38 }
 0xf93   :  { %2051 = vrcp.f32 %v841_v32 }
 0xfa0   :  { %v2052_v33 = vpop.eup %2051 }
0x1002   :  { %v861_v34 = vpop.permute.xlu0 %860 }
0x1003   :  { %v863_v43 = vmul.f32 %v2052_v33, %v861_v34 }
0x1005   :  { %865 = vst.msk [vmem:[#allocation3 + $0x30] sm:$0xff] %vm284_vm2, %v863_v43  ;;  %v871_v44 = vpack.c.bf16 %v863_v43, %v863_v43 }
0x1007   :  { %1872 = vmatmul.mubr.msk.bf16.vlgmr.msra.gmra.mxu1 %vm284_vm2, %v871_v44 }
0x1008   :  { %1182 = vmatpush1.bf16.msra.mxu1 %v2505_v30  ;;  %1205 = vmatprep.mubr.bf16.mxu1 %v2230_v1 }
0x1009   :  { %1183 = vmatprep.subr.bf16.mxu1 %v2510_v8 }
0x100c   :  { %1184 = vmatpush1.bf16.msra.mxu1 %v2512_v11 }
0x100d   :  { %1185 = vmatprep.subr.bf16.mxu1 %v2516_v12 }
0x1010   :  { %1186 = vmatpush1.bf16.msra.mxu1 %v2518_v13 }
0x1011   :  { %1187 = vmatprep.subr.bf16.mxu1 %v2523_v2 }
0x1014   :  { %1188 = vmatpush1.bf16.msra.mxu1 %v2525_v37 }
0x1015   :  { %1260 = vmatprep.subr.bf16.mxu1 %v2503_v6 }
0x1017   :  { %1206 = vmatmul.mubr.bf16.vlgmr.msra.gmra.mxu1 %v2230_v1 }
0x1018   :  { %1261 = vmatpush1.bf16.msra.mxu1 %v2505_v30  ;;  %1284 = vmatprep.mubr.bf16.mxu1 %v2230_v1 }
0x1019   :  { %1262 = vmatprep.subr.bf16.mxu1 %v2510_v8 }
0x101c   :  { %1263 = vmatpush1.bf16.msra.mxu1 %v2512_v11 }
0x101d   :  { %1264 = vmatprep.subr.bf16.mxu1 %v2516_v12 }
0x1020   :  { %1265 = vmatpush1.bf16.msra.mxu1 %v2518_v13 }
0x1021   :  { %1266 = vmatprep.subr.bf16.mxu1 %v2523_v2 }
0x1024   :  { %1267 = vmatpush1.bf16.msra.mxu1 %v2525_v37 }
0x1025   :  { %1418 = vmatprep.subr.bf16.mxu1 %v2503_v6 }
0x10c7   :  { %v909_v46 = vpop.f32.mrf.mxu1 }
0x10c8   :  { %v916_v47 = vadd.f32 %v909_v46, %v211_v45  ;;  %v956_v46 = vld [vmem:[#allocation3 + $0x30] sm:$0xff] }
0x10c9   :  { %v911_v48 = vpop.f32.mrf.mxu1 }
0x10ca   :  { %v917_v20 = vadd.f32 %v911_v48, %v213_v16  ;;  %v1873_v7 = vmul.f32 -1.442695, %v916_v47 }
0x10cb   :  { %v913_v49 = vpop.f32.mrf.mxu1 }
0x10cc   :  { %v1072_v49 = vpop.f32.mrf.mxu0 }
0x10cd   :  { %v914_v50 = vpop.f32.mrf.mxu1  ;;  %v1073_v51 = vadd.f32 %v1072_v49, %v2558_v52 }
0x10ce   :  { %v1074_v50 = vpop.f32.mrf.mxu0 }
0x10d7   :  { %v1207_v41 = vpop.f32.mrf.mxu1 }
0x10d8   :  { %v1214_v56 = vadd.f32 %v1207_v41, %v1069_v54  ;;  %v1075_v54 = vadd.f32 %v1074_v50, %v2563_v55 }
0x10d9   :  { %v1209_v57 = vpop.f32.mrf.mxu1 }
0x10da   :  { %v1215_v60 = vadd.f32 %v1209_v57, %v1071_v58  ;;  %v1895_v17 = vmul.f32 -1.442695, %v1214_v56 }
0x10db   :  { %v1211_v59 = vpop.f32.mrf.mxu1 }
0x10dc   :  { %2053 = vtanh.f32 %v1215_v60  ;;  %v1896_v25 = vmul.f32 -1.442695, %v1215_v60 }
0x10dd   :  { %v1212_v61 = vpop.f32.mrf.mxu1  ;;  %2055 = vpow2.f32 %v1895_v17 }
0x10e9   :  { %v2054_v62 = vpop.eup %2053 }
0x10ea   :  { %1231 = vrot.lane.b32.xlu1 %v2054_v62, %s2231_s3  ;;  %v2056_v63 = vpop.eup %2055 }
0x10eb   :  { %v1222_v0 = vadd.f32 1.0, %v2056_v63 }
0x10ed   :  { %2057 = vrcp.f32 %v1222_v0 }
0x10ee   :  { %2059 = vtanh.f32 %v917_v20 }
0x10ef   :  { %2061 = vpow2.f32 %v1873_v7 }
0x10fa   :  { %v2058_v35 = vpop.eup %2057 }
0x10fb   :  { %v2060_v5 = vpop.eup %2059  ;;  %v1229_v15 = vmul.f32 0.0, %v2058_v35 }
0x10fc   :  { %v2062_v9 = vpop.eup %2061 }
0x10fd   :  { %v924_v10 = vadd.f32 1.0, %v2062_v9 }
0x10ff   :  { %2063 = vrcp.f32 %v924_v10 }
0x110c   :  { %v2064_v23 = vpop.eup %2063 }
0x110d   :  { %v931_v39 = vmul.f32 %v2064_v23, %v2500_v29  ;;  %v1874_v29 = vmul.f32 -1.442695, %v917_v20 }
0x115c   :  { %v1232_v4 = vpop.permute.xlu1 %1231 }
0x115d   :  { %v1234_v36 = vmul.f32 %v2058_v35, %v1232_v4 }
0x115f   :  { %1236 = vrot.lane.b32.xlu0 %v1234_v36, %s2231_s3 }
0x1163   :  { %933 = vrot.lane.b32.xlu0 %v2060_v5, %s2231_s3 }
0x11d1   :  { %v1237_v18 = vpop.permute.xlu0 %1236 }
0x11d2   :  { %v2571_v21 = vadd.f32 %v1237_v18, %v1229_v15 }
0x11d4   :  { %2065 = vtanh.f32 %v2571_v21 }
0x11d5   :  { %v934_v42 = vpop.permute.xlu0 %933  ;;  %2067 = vpow2.f32 %v1896_v25 }
0x11d6   :  { %v936_v22 = vmul.f32 %v2064_v23, %v934_v42 }
0x11d8   :  { %938 = vrot.lane.b32.xlu0 %v936_v22, %s2231_s3 }
0x11e1   :  { %v2066_v24 = vpop.eup %2065 }
0x11e2   :  { %1242 = vrot.lane.b32.xlu1 %v2066_v24, %s2231_s3  ;;  %v2068_v26 = vpop.eup %2067 }
0x11e3   :  { %v1223_v27 = vadd.f32 1.0, %v2068_v26 }
0x11e5   :  { %2069 = vrcp.f32 %v1223_v27 }
0x11f2   :  { %v2070_v28 = vpop.eup %2069 }
0x124a   :  { %v939_v3 = vpop.permute.xlu0 %938 }
0x124b   :  { %v941_v40 = vadd.f32 %v939_v3, %v931_v39 }
0x124d   :  { %2071 = vtanh.f32 %v941_v40 }
0x124e   :  { %2073 = vpow2.f32 %v1874_v29 }
0x1254   :  { %v1243_v14 = vpop.permute.xlu1 %1242 }
0x1255   :  { %v1245_v31 = vmul.f32 %v2070_v28, %v1243_v14 }
0x1257   :  { %v1248_v38 = vpack.c.bf16 %v1245_v31, %v1245_v31 }
0x1259   :  { %1897 = vmatmul.mubr.msk.bf16.vlgmr.msra.gmra.mxu1 %vm284_vm2, %v1248_v38 }
0x125a   :  { %v2072_v32 = vpop.eup %2071  ;;  %1419 = vmatpush1.bf16.msra.mxu1 %v2505_v30  ;;  %1442 = vmatprep.mubr.bf16.mxu1 %v2230_v1 }
0x125b   :  { %944 = vrot.lane.b32.xlu0 %v2072_v32, %s2231_s3  ;;  %1420 = vmatprep.subr.bf16.mxu1 %v2510_v8  ;;  %v2074_v33 = vpop.eup %2073 }
0x125c   :  { %v925_v34 = vadd.f32 1.0, %v2074_v33 }
0x125e   :  { %1421 = vmatpush1.bf16.msra.mxu1 %v2512_v11  ;;  %2075 = vrcp.f32 %v925_v34 }
0x125f   :  { %1422 = vmatprep.subr.bf16.mxu1 %v2516_v12 }
0x1262   :  { %1423 = vmatpush1.bf16.msra.mxu1 %v2518_v13 }
0x1263   :  { %1424 = vmatprep.subr.bf16.mxu1 %v2523_v2 }
0x1266   :  { %1425 = vmatpush1.bf16.msra.mxu1 %v2525_v37 }
0x1267   :  { %1576 = vmatprep.subr.bf16.mxu1 %v2503_v6 }
0x126b   :  { %v2076_v43 = vpop.eup %2075 }
0x12cd   :  { %v945_v44 = vpop.permute.xlu0 %944 }
0x12ce   :  { %v947_v45 = vmul.f32 %v2076_v43, %v945_v44 }
0x12d0   :  { %949 = vst.msk [vmem:[#allocation3 + $0x38] sm:$0xff] %vm284_vm2, %v947_v45 }
0x12d7   :  { %v957_v47 = vld [vmem:[#allocation3 + $0x38] sm:$0xff] }
0x12d8   :  { %v961_v48 = vpack.c.bf16 %v957_v47, %v956_v46 }
0x12da   :  { %1886 = vmatmul.mubr.msk.bf16.gmra.mxu0 %vm284_vm2, %v961_v48 }
0x12db   :  { %1363 = vmatprep.mubr.bf16.mxu0 %v2230_v1 }
0x1319   :  { %v1286_v53 = vpop.f32.mrf.mxu1 }
0x131a   :  { %v1293_v19 = vadd.f32 %v1286_v53, %v1073_v51 }
0x131b   :  { %v1288_v41 = vpop.f32.mrf.mxu1 }
0x131c   :  { %v1294_v56 = vadd.f32 %v1288_v41, %v1075_v54  ;;  %v1898_v60 = vmul.f32 -1.442695, %v1293_v19 }
0x131d   :  { %v1290_v57 = vpop.f32.mrf.mxu1 }
0x131e   :  { %2077 = vtanh.f32 %v1294_v56  ;;  %v1899_v36 = vmul.f32 -1.442695, %v1294_v56 }
0x131f   :  { %v1291_v58 = vpop.f32.mrf.mxu1  ;;  %2079 = vpow2.f32 %v1898_v60 }
0x132b   :  { %v2078_v59 = vpop.eup %2077 }
0x132c   :  { %1310 = vrot.lane.b32.xlu1 %v2078_v59, %s2231_s3  ;;  %v2080_v61 = vpop.eup %2079 }
0x132d   :  { %v1301_v62 = vadd.f32 1.0, %v2080_v61 }
0x132f   :  { %2081 = vrcp.f32 %v1301_v62 }
0x133c   :  { %v2082_v17 = vpop.eup %2081 }
0x133d   :  { %v1308_v16 = vmul.f32 %v2082_v17, %v2571_v21  ;;  %v1078_v21 = vpop.f32.mrf.mxu0 }
0x133e   :  { %v1079_v14 = vadd.f32 %v1078_v21, %v2558_v52 }
0x133f   :  { %v1080_v23 = vpop.f32.mrf.mxu0 }
0x1340   :  { %v1081_v38 = vadd.f32 %v1080_v23, %v2563_v55 }
0x1341   :  { %v1082_v42 = vpop.f32.mrf.mxu0 }
0x1342   :  { %v1083_v62 = vadd.f32 %v1082_v42, %v2558_v52 }
0x1343   :  { %v1084_v22 = vpop.f32.mrf.mxu0 }
0x1345   :  { %v2607_v24 = vpop.f32.mrf.mxu0 }
0x1347   :  { %v2609_v25 = vpop.f32.mrf.mxu0 }
0x1349   :  { %v2611_v26 = vpop.f32.mrf.mxu0 }
0x134b   :  { %v2613_v27 = vpop.f32.mrf.mxu0 }
0x139a   :  { %v2615_v39 = vpop.f32.mrf.mxu0 }
0x139c   :  { %v2617_v3 = vpop.f32.mrf.mxu0 }
0x139e   :  { %v1311_v63 = vpop.permute.xlu1 %1310  ;;  %v2619_v40 = vpop.f32.mrf.mxu0 }
0x139f   :  { %v1313_v0 = vmul.f32 %v2082_v17, %v1311_v63  ;;  %v1085_v63 = vadd.f32 %v1084_v22, %v2563_v55 }
0x13a0   :  { %v2621_v28 = vpop.f32.mrf.mxu0 }
0x13a1   :  { %1315 = vrot.lane.b32.xlu1 %v1313_v0, %s2231_s3 }
0x1413   :  { %v1316_v20 = vpop.permute.xlu1 %1315 }
0x1414   :  { %v1318_v35 = vadd.f32 %v1316_v20, %v1308_v16 }
0x1416   :  { %2083 = vtanh.f32 %v1318_v35 }
0x1417   :  { %2085 = vpow2.f32 %v1899_v36 }
0x1423   :  { %v2084_v4 = vpop.eup %2083 }
0x1424   :  { %1321 = vrot.lane.b32.xlu1 %v2084_v4, %s2231_s3  ;;  %v2086_v5 = vpop.eup %2085 }
0x1425   :  { %v1302_v7 = vadd.f32 1.0, %v2086_v5 }
0x1427   :  { %2087 = vrcp.f32 %v1302_v7 }
0x1434   :  { %v2088_v9 = vpop.eup %2087 }
0x1496   :  { %v1322_v10 = vpop.permute.xlu1 %1321 }
0x1497   :  { %v1324_v15 = vmul.f32 %v2088_v9, %v1322_v10 }
0x1499   :  { %v1327_v18 = vpack.c.bf16 %v1324_v15, %v1324_v15 }
0x149b   :  { %1900 = vmatmul.mubr.msk.bf16.vlgmr.msra.gmra.mxu0 %vm284_vm2, %v1327_v18 }
0x149c   :  { %1498 = vmatpush1.bf16.msra.mxu0 %v2505_v30  ;;  %1521 = vmatprep.mubr.bf16.mxu0 %v2230_v1 }
0x149d   :  { %1499 = vmatprep.subr.bf16.mxu0 %v2510_v8 }
0x14a0   :  { %1500 = vmatpush1.bf16.msra.mxu0 %v2512_v11 }
0x14a1   :  { %1501 = vmatprep.subr.bf16.mxu0 %v2516_v12 }
0x14a4   :  { %1502 = vmatpush1.bf16.msra.mxu0 %v2518_v13 }
0x14a5   :  { %1503 = vmatprep.subr.bf16.mxu0 %v2523_v2 }
0x14a8   :  { %1504 = vmatpush1.bf16.msra.mxu0 %v2525_v37 }
0x14a9   :  { %1655 = vmatprep.subr.bf16.mxu0 %v2503_v6 }
0x155b   :  { %v1365_v31 = vpop.f32.mrf.mxu0 }
0x155c   :  { %v1372_v32 = vadd.f32 %v1365_v31, %v1079_v14 }
0x155d   :  { %v1367_v29 = vpop.f32.mrf.mxu0 }
0x155e   :  { %v1373_v33 = vadd.f32 %v1367_v29, %v1081_v38  ;;  %v1901_v45 = vmul.f32 -1.442695, %v1372_v32 }
0x155f   :  { %v1369_v34 = vpop.f32.mrf.mxu0 }
0x1560   :  { %2089 = vtanh.f32 %v1373_v33  ;;  %v1902_v41 = vmul.f32 -1.442695, %v1373_v33  ;;  %v1089_v34 = vadd.f32 %v2607_v24, %v2558_v52 }
0x1561   :  { %v1370_v43 = vpop.f32.mrf.mxu0  ;;  %2091 = vpow2.f32 %v1901_v45 }
0x156d   :  { %v2090_v44 = vpop.eup %2089 }
0x156e   :  { %1389 = vrot.lane.b32.xlu0 %v2090_v44, %s2231_s3  ;;  %v2092_v46 = vpop.eup %2091  ;;  %v1091_v44 = vadd.f32 %v2609_v25, %v2563_v55 }
0x156f   :  { %v1380_v47 = vadd.f32 1.0, %v2092_v46 }
0x1571   :  { %2093 = vrcp.f32 %v1380_v47 }
0x157e   :  { %v2094_v48 = vpop.eup %2093 }
0x157f   :  { %v1387_v51 = vmul.f32 %v2094_v48, %v1318_v35 }
0x15e0   :  { %v1390_v49 = vpop.permute.xlu0 %1389 }
0x15e1   :  { %v1392_v50 = vmul.f32 %v2094_v48, %v1390_v49 }
0x15e3   :  { %1394 = vrot.lane.b32.xlu1 %v1392_v50, %s2231_s3 }
0x1655   :  { %v1395_v53 = vpop.permute.xlu1 %1394 }
0x1656   :  { %v1397_v54 = vadd.f32 %v1395_v53, %v1387_v51 }
0x1658   :  { %2095 = vtanh.f32 %v1397_v54 }
0x1659   :  { %2097 = vpow2.f32 %v1902_v41 }
0x1665   :  { %v2096_v19 = vpop.eup %2095 }
0x1666   :  { %1400 = vrot.lane.b32.xlu0 %v2096_v19, %s2231_s3  ;;  %v2098_v56 = vpop.eup %2097 }
0x1667   :  { %v1381_v57 = vadd.f32 1.0, %v2098_v56 }
0x1669   :  { %2099 = vrcp.f32 %v1381_v57 }
0x1676   :  { %v2100_v58 = vpop.eup %2099 }
0x16d8   :  { %v1401_v59 = vpop.permute.xlu0 %1400 }
0x16d9   :  { %v1403_v60 = vmul.f32 %v2100_v58, %v1401_v59 }
0x16db   :  { %v1406_v61 = vpack.c.bf16 %v1403_v60, %v1403_v60 }
0x16dd   :  { %1903 = vmatmul.mubr.msk.bf16.vlgmr.msra.gmra.mxu1 %vm284_vm2, %v1406_v61 }
0x16de   :  { %1577 = vmatpush1.bf16.msra.mxu1 %v2505_v30  ;;  %1600 = vmatprep.mubr.bf16.mxu1 %v2230_v1 }
0x16df   :  { %1578 = vmatprep.subr.bf16.mxu1 %v2510_v8 }
0x16e2   :  { %1579 = vmatpush1.bf16.msra.mxu1 %v2512_v11 }
0x16e3   :  { %1580 = vmatprep.subr.bf16.mxu1 %v2516_v12 }
0x16e6   :  { %1581 = vmatpush1.bf16.msra.mxu1 %v2518_v13 }
0x16e7   :  { %1582 = vmatprep.subr.bf16.mxu1 %v2523_v2 }
0x16ea   :  { %1583 = vmatpush1.bf16.msra.mxu1 %v2525_v37 }
0x16eb   :  { %1734 = vmatprep.subr.bf16.mxu1 %v2503_v6 }
0x179d   :  { %v1444_v17 = vpop.f32.mrf.mxu1 }
0x179e   :  { %v1451_v0 = vadd.f32 %v1444_v17, %v1083_v62 }
0x179f   :  { %v1446_v16 = vpop.f32.mrf.mxu1 }
0x17a0   :  { %v1452_v20 = vadd.f32 %v1446_v16, %v1085_v63  ;;  %v1904_v5 = vmul.f32 -1.442695, %v1451_v0  ;;  %v1093_v16 = vadd.f32 %v2611_v26, %v2558_v52 }
0x17a1   :  { %v1448_v35 = vpop.f32.mrf.mxu1 }
0x17a2   :  { %2101 = vtanh.f32 %v1452_v20  ;;  %v1905_v22 = vmul.f32 -1.442695, %v1452_v20 }
0x17a3   :  { %v1449_v4 = vpop.f32.mrf.mxu1  ;;  %2103 = vpow2.f32 %v1904_v5 }
0x17af   :  { %v2102_v36 = vpop.eup %2101 }
0x17b0   :  { %1468 = vrot.lane.b32.xlu1 %v2102_v36, %s2231_s3  ;;  %v2104_v7 = vpop.eup %2103 }
0x17b1   :  { %v1459_v9 = vadd.f32 1.0, %v2104_v7 }
0x17b3   :  { %2105 = vrcp.f32 %v1459_v9 }
0x17c0   :  { %v2106_v6 = vpop.eup %2105 }
0x17c1   :  { %v1466_v18 = vmul.f32 %v2106_v6, %v1397_v54 }
0x1822   :  { %v1469_v10 = vpop.permute.xlu1 %1468 }
0x1823   :  { %v1471_v15 = vmul.f32 %v2106_v6, %v1469_v10 }
0x1825   :  { %1473 = vrot.lane.b32.xlu0 %v1471_v15, %s2231_s3 }
0x1897   :  { %v1474_v21 = vpop.permute.xlu0 %1473 }
0x1898   :  { %v1476_v23 = vadd.f32 %v1474_v21, %v1466_v18 }
0x189a   :  { %2107 = vtanh.f32 %v1476_v23 }
0x189b   :  { %2109 = vpow2.f32 %v1905_v22 }
0x18a7   :  { %v2108_v42 = vpop.eup %2107 }
0x18a8   :  { %1479 = vrot.lane.b32.xlu1 %v2108_v42, %s2231_s3  ;;  %v2110_v14 = vpop.eup %2109 }
0x18a9   :  { %v1460_v31 = vadd.f32 1.0, %v2110_v14  ;;  %v1099_v14 = vadd.f32 %v2615_v39, %v2558_v52 }
0x18ab   :  { %2111 = vrcp.f32 %v1460_v31 }
0x18b8   :  { %v2112_v38 = vpop.eup %2111 }
0x191a   :  { %v1480_v32 = vpop.permute.xlu1 %1479 }
0x191b   :  { %v1482_v29 = vmul.f32 %v2112_v38, %v1480_v32  ;;  %v1101_v38 = vadd.f32 %v2617_v3, %v2563_v55 }
0x191d   :  { %v1485_v33 = vpack.c.bf16 %v1482_v29, %v1482_v29 }
0x191f   :  { %1906 = vmatmul.mubr.msk.bf16.vlgmr.msra.gmra.mxu0 %vm284_vm2, %v1485_v33 }
0x1920   :  { %1656 = vmatpush1.bf16.msra.mxu0 %v2505_v30  ;;  %1679 = vmatprep.mubr.bf16.mxu0 %v2230_v1 }
0x1921   :  { %1657 = vmatprep.subr.bf16.mxu0 %v2510_v8 }
0x1924   :  { %1658 = vmatpush1.bf16.msra.mxu0 %v2512_v11 }
0x1925   :  { %1659 = vmatprep.subr.bf16.mxu0 %v2516_v12 }
0x1928   :  { %1660 = vmatpush1.bf16.msra.mxu0 %v2518_v13 }
0x1929   :  { %1661 = vmatprep.subr.bf16.mxu0 %v2523_v2 }
0x192c   :  { %1662 = vmatpush1.bf16.msra.mxu0 %v2525_v37 }
0x19df   :  { %v1523_v43 = vpop.f32.mrf.mxu0 }
0x19e0   :  { %v1530_v45 = vadd.f32 %v1523_v43, %v1089_v34 }
0x19e1   :  { %v1525_v46 = vpop.f32.mrf.mxu0 }
0x19e2   :  { %v1531_v47 = vadd.f32 %v1525_v46, %v1091_v44  ;;  %v1907_v51 = vmul.f32 -1.442695, %v1530_v45 }
0x19e3   :  { %v1527_v48 = vpop.f32.mrf.mxu0 }
0x19e4   :  { %2113 = vtanh.f32 %v1531_v47  ;;  %v1908_v59 = vmul.f32 -1.442695, %v1531_v47 }
0x19e5   :  { %v1528_v49 = vpop.f32.mrf.mxu0  ;;  %2115 = vpow2.f32 %v1907_v51 }
0x19f1   :  { %v2114_v50 = vpop.eup %2113 }
0x19f2   :  { %1547 = vrot.lane.b32.xlu0 %v2114_v50, %s2231_s3  ;;  %v2116_v53 = vpop.eup %2115 }
0x19f3   :  { %v1538_v54 = vadd.f32 1.0, %v2116_v53 }
0x19f5   :  { %2117 = vrcp.f32 %v1538_v54 }
0x1a02   :  { %v2118_v19 = vpop.eup %2117 }
0x1a03   :  { %v1545_v25 = vmul.f32 %v2118_v19, %v1476_v23 }
0x1a64   :  { %v1548_v24 = vpop.permute.xlu0 %1547 }
0x1a65   :  { %v1550_v41 = vmul.f32 %v2118_v19, %v1548_v24 }
0x1a67   :  { %1552 = vrot.lane.b32.xlu1 %v1550_v41, %s2231_s3 }
0x1ad9   :  { %v1553_v56 = vpop.permute.xlu1 %1552 }
0x1ada   :  { %v1555_v57 = vadd.f32 %v1553_v56, %v1545_v25 }
0x1adc   :  { %2119 = vtanh.f32 %v1555_v57 }
0x1add   :  { %2121 = vpow2.f32 %v1908_v59 }
0x1ae9   :  { %v2120_v58 = vpop.eup %2119 }
0x1aea   :  { %1558 = vrot.lane.b32.xlu0 %v2120_v58, %s2231_s3  ;;  %v2122_v60 = vpop.eup %2121  ;;  %v1103_v58 = vadd.f32 %v2619_v40, %v2558_v52 }
0x1aeb   :  { %v1539_v61 = vadd.f32 1.0, %v2122_v60  ;;  %v1105_v60 = vadd.f32 %v2621_v28, %v2563_v55 }
0x1aed   :  { %2123 = vrcp.f32 %v1539_v61 }
0x1afa   :  { %v2124_v62 = vpop.eup %2123 }
0x1b5c   :  { %v1559_v17 = vpop.permute.xlu0 %1558 }
0x1b5d   :  { %v1561_v63 = vmul.f32 %v2124_v62, %v1559_v17 }
0x1b5f   :  { %v1564_v0 = vpack.c.bf16 %v1561_v63, %v1561_v63 }
0x1b61   :  { %1909 = vmatmul.mubr.msk.bf16.vlgmr.msra.gmra.mxu1 %vm284_vm2, %v1564_v0 }
0x1b62   :  { %1735 = vmatpush1.bf16.msra.mxu1 %v2505_v30  ;;  %1758 = vmatprep.mubr.bf16.mxu1 %v2230_v1  ;;  %v1095_v30 = vadd.f32 %v2613_v27, %v2563_v55 }
0x1b63   :  { %1736 = vmatprep.subr.bf16.mxu1 %v2510_v8 }
0x1b66   :  { %1737 = vmatpush1.bf16.msra.mxu1 %v2512_v11 }
0x1b67   :  { %1738 = vmatprep.subr.bf16.mxu1 %v2516_v12 }
0x1b6a   :  { %1739 = vmatpush1.bf16.msra.mxu1 %v2518_v13 }
0x1b6b   :  { %1740 = vmatprep.subr.bf16.mxu1 %v2523_v2 }
0x1b6e   :  { %1741 = vmatpush1.bf16.msra.mxu1 %v2525_v37 }
0x1c21   :  { %v1602_v20 = vpop.f32.mrf.mxu1 }
0x1c22   :  { %v1609_v1 = vadd.f32 %v1602_v20, %v1093_v16 }
0x1c23   :  { %v1604_v35 = vpop.f32.mrf.mxu1 }
0x1c24   :  { %v1610_v8 = vadd.f32 %v1604_v35, %v1095_v30  ;;  %v1910_v13 = vmul.f32 -1.442695, %v1609_v1 }
0x1c25   :  { %v1606_v4 = vpop.f32.mrf.mxu1 }
0x1c26   :  { %2125 = vtanh.f32 %v1610_v8  ;;  %v1911_v10 = vmul.f32 -1.442695, %v1610_v8 }
0x1c27   :  { %v1607_v11 = vpop.f32.mrf.mxu1  ;;  %2127 = vpow2.f32 %v1910_v13 }
0x1c33   :  { %v2126_v12 = vpop.eup %2125 }
0x1c34   :  { %1626 = vrot.lane.b32.xlu1 %v2126_v12, %s2231_s3  ;;  %v2128_v2 = vpop.eup %2127 }
0x1c35   :  { %v1617_v37 = vadd.f32 1.0, %v2128_v2 }
0x1c37   :  { %2129 = vrcp.f32 %v1617_v37 }
0x1c44   :  { %v2130_v36 = vpop.eup %2129 }
0x1c45   :  { %v1624_v27 = vmul.f32 %v2130_v36, %v1555_v57 }
0x1ca6   :  { %v1627_v26 = vpop.permute.xlu1 %1626 }
0x1ca7   :  { %v1629_v5 = vmul.f32 %v2130_v36, %v1627_v26  ;;  %v1918_v36 = vld [vmem:[%s2705_s7] ss:$0 sm:$0xff] }
0x1ca9   :  { %1631 = vrot.lane.b32.xlu0 %v1629_v5, %s2231_s3 }
0x1d1b   :  { %v1632_v7 = vpop.permute.xlu0 %1631 }
0x1d1c   :  { %v1634_v9 = vadd.f32 %v1632_v7, %v1624_v27  ;;  %v1919_v7 = vld [vmem:[#allocation4] ss:$0 sm:$0xff] }
0x1d1e   :  { %2131 = vtanh.f32 %v1634_v9 }
0x1d1f   :  { %2133 = vpow2.f32 %v1911_v10 }
0x1d2b   :  { %v2132_v6 = vpop.eup %2131 }
0x1d2c   :  { %1637 = vrot.lane.b32.xlu1 %v2132_v6, %s2231_s3  ;;  %v2134_v15 = vpop.eup %2133 }
0x1d2d   :  { %v1618_v18 = vadd.f32 1.0, %v2134_v15 }
0x1d2f   :  { %2135 = vrcp.f32 %v1618_v18 }
0x1d3c   :  { %v2136_v21 = vpop.eup %2135 }
0x1d9e   :  { %v1638_v23 = vpop.permute.xlu1 %1637 }
0x1d9f   :  { %v1640_v42 = vmul.f32 %v2136_v21, %v1638_v23 }
0x1da1   :  { %v1643_v22 = vpack.c.bf16 %v1640_v42, %v1640_v42 }
0x1da3   :  { %1912 = vmatmul.mubr.msk.bf16.vlgmr.msra.gmra.mxu0 %vm284_vm2, %v1643_v22 }
0x1e63   :  { %v1681_v31 = vpop.f32.mrf.mxu0 }
0x1e64   :  { %v1688_v32 = vadd.f32 %v1681_v31, %v1099_v14 }
0x1e65   :  { %v1683_v29 = vpop.f32.mrf.mxu0 }
0x1e66   :  { %v1689_v33 = vadd.f32 %v1683_v29, %v1101_v38  ;;  %v1913_v45 = vmul.f32 -1.442695, %v1688_v32 }
0x1e67   :  { %v1685_v34 = vpop.f32.mrf.mxu0 }
0x1e68   :  { %2137 = vtanh.f32 %v1689_v33  ;;  %v1914_v54 = vmul.f32 -1.442695, %v1689_v33 }
0x1e69   :  { %v1686_v43 = vpop.f32.mrf.mxu0  ;;  %2139 = vpow2.f32 %v1913_v45 }
0x1e75   :  { %v2138_v44 = vpop.eup %2137 }
0x1e76   :  { %1705 = vrot.lane.b32.xlu0 %v2138_v44, %s2231_s3  ;;  %v2140_v46 = vpop.eup %2139 }
0x1e77   :  { %v1696_v47 = vadd.f32 1.0, %v2140_v46 }
0x1e79   :  { %2141 = vrcp.f32 %v1696_v47 }
0x1e86   :  { %v2142_v48 = vpop.eup %2141 }
0x1e87   :  { %v1703_v3 = vmul.f32 %v2142_v48, %v1634_v9 }
0x1ee8   :  { %v1706_v39 = vpop.permute.xlu0 %1705 }
0x1ee9   :  { %v1708_v49 = vmul.f32 %v2142_v48, %v1706_v39 }
0x1eeb   :  { %1710 = vrot.lane.b32.xlu1 %v1708_v49, %s2231_s3 }
0x1f5d   :  { %v1711_v50 = vpop.permute.xlu1 %1710 }
0x1f5e   :  { %v1713_v51 = vadd.f32 %v1711_v50, %v1703_v3 }
0x1f60   :  { %2143 = vtanh.f32 %v1713_v51 }
0x1f61   :  { %2145 = vpow2.f32 %v1914_v54 }
0x1f6d   :  { %v2144_v53 = vpop.eup %2143 }
0x1f6e   :  { %1716 = vrot.lane.b32.xlu0 %v2144_v53, %s2231_s3  ;;  %v2146_v19 = vpop.eup %2145 }
0x1f6f   :  { %v1697_v24 = vadd.f32 1.0, %v2146_v19 }
0x1f71   :  { %2147 = vrcp.f32 %v1697_v24 }
0x1f7e   :  { %v2148_v41 = vpop.eup %2147 }
0x1fe0   :  { %v1717_v25 = vpop.permute.xlu0 %1716 }
0x1fe1   :  { %v1719_v56 = vmul.f32 %v2148_v41, %v1717_v25 }
0x1fe3   :  { %v1722_v57 = vpack.c.bf16 %v1719_v56, %v1719_v56 }
0x1fe5   :  { %1915 = vmatmul.mubr.msk.bf16.vlgmr.msra.gmra.mxu1 %vm284_vm2, %v1722_v57 }
0x20a5   :  { %v1760_v59 = vpop.f32.mrf.mxu1 }
0x20a6   :  { %v1767_v61 = vadd.f32 %v1760_v59, %v1103_v58 }
0x20a7   :  { %v1762_v62 = vpop.f32.mrf.mxu1 }
0x20a8   :  { %v1768_v17 = vadd.f32 %v1762_v62, %v1105_v60  ;;  %v1916_v20 = vmul.f32 -1.442695, %v1767_v61 }
0x20a9   :  { %v1764_v63 = vpop.f32.mrf.mxu1 }
0x20aa   :  { %2149 = vtanh.f32 %v1768_v17  ;;  %v1917_v11 = vmul.f32 -1.442695, %v1768_v17 }
0x20ab   :  { %v1765_v0 = vpop.f32.mrf.mxu1  ;;  %2151 = vpow2.f32 %v1916_v20 }
0x20b7   :  { %v2150_v16 = vpop.eup %2149 }
0x20b8   :  { %1784 = vrot.lane.b32.xlu1 %v2150_v16, %s2231_s3  ;;  %v2152_v30 = vpop.eup %2151 }
0x20b9   :  { %v1775_v1 = vadd.f32 1.0, %v2152_v30 }
0x20bb   :  { %2153 = vrcp.f32 %v1775_v1 }
0x20c8   :  { %v2154_v35 = vpop.eup %2153 }
0x20c9   :  { %v1782_v55 = vmul.f32 %v2154_v35, %v1713_v51 }
0x212a   :  { %v1785_v52 = vpop.permute.xlu1 %1784 }
0x212b   :  { %v1787_v40 = vmul.f32 %v2154_v35, %v1785_v52 }
0x212d   :  { %1789 = vrot.lane.b32.xlu0 %v1787_v40, %s2231_s3 }
0x219f   :  { %v1790_v28 = vpop.permute.xlu0 %1789 }
0x21a0   :  { %v1792_v8 = vadd.f32 %v1790_v28, %v1782_v55 }
0x21a2   :  { %2155 = vtanh.f32 %v1792_v8 }
0x21a3   :  { %2157 = vpow2.f32 %v1917_v11 }
0x21af   :  { %v2156_v4 = vpop.eup %2155 }
0x21b0   :  { %1795 = vrot.lane.b32.xlu1 %v2156_v4, %s2231_s3  ;;  %v2158_v12 = vpop.eup %2157 }
0x21b1   :  { %v1776_v13 = vadd.f32 1.0, %v2158_v12 }
0x21b3   :  { %2159 = vrcp.f32 %v1776_v13 }
0x21c0   :  { %v2160_v2 = vpop.eup %2159 }
0x2222   :  { %v1796_v37 = vpop.permute.xlu1 %1795 }
0x2223   :  { %v1798_v26 = vmul.f32 %v2160_v2, %v1796_v37 }
0x2225   :  { %v1806_v5 = vmul.f32 %v1918_v36, %v1798_v26 }
0x2227   :  { %v1807_v27 = vsel %vm284_vm2, %v1806_v5, 0.0 }
0x2228   :  { %1808 = vadd.xlane.f32.xlu0 %v1807_v27 }
0x22b1   :  { %v1809_v9 = vpop.xlane.xlu0 %1808 }
0x22b2   :  { %v1817_v6 = vadd.f32 %v1919_v7, %v1809_v9 }
0x22b4   :  { %1819 = vst.msk [vmem:[%s2707_s9] sm:$0xff] %vm1818_vm3, %v1817_v6 }
0x22b5   :  { %1824 = vsyncpa [#allocation6], 1 }
0x22b6   :  { %1825 = vsyncpa [#allocation8], 1 }

</bundles_post_ra>
